<compile_context>
chip_gen: v5e
topology: v5e:2x2
jax: 0.10.0
libtpu: 0.0.40
codegen_flags: <defaults>
</compile_context>

<pallas_src>
import jax
import jax.numpy as jnp
import numpy as np
from jax.experimental import pallas as pl
from jax.experimental.pallas import tpu as pltpu

FEATURES = 32          # C  (input/output channels)
WH = 16                # spatial H = W
M = 2                  # number of branches
R = 8
L = 32
D = max(FEATURES // R, L)   # = 32, dim of z
EPS = 1e-5             # BatchNorm eps


def skconv_kernel(
    xcat_ref,    # [HW, 9C]   im2col of zero-padded input, taps concatenated on lanes
    wconv_ref,   # [9C, 2C]   fused (BN-folded) conv weight: cols 0:C = 1x1, C:2C = 3x3
    wfc_ref,     # [C, D]     fc weight (in, out)
    wfcs_ref,    # [D, 2C]    concat(fcs[0], fcs[1]) weights (in, out)
    bias_ref,    # [3, 2C]    row0: fused conv bias, row1: 2*bfc (padded), row2: 2*bfcs
    out_ref,     # [HW, C]    fused feature map (before crop)
):
    HW = xcat_ref.shape[0]
    C2 = wconv_ref.shape[1]      # 2*C
    C = C2 // 2
    Dd = wfc_ref.shape[1]

    # ---- both conv branches in one MXU contraction, BN folded, lane-fused ----
    fea = jnp.dot(xcat_ref[...], wconv_ref[...],
                  preferred_element_type=jnp.float32) + bias_ref[0:1, :]
    fea = jnp.maximum(fea, 0.0)                       # [HW, 2C]

    fea0 = fea[:, :C]                                 # 1x1 branch  [HW, C]
    fea1 = fea[:, C:]                                 # 3x3 branch  [HW, C]
    fea_U = fea0 + fea1                               # [HW, C]

    # ---- global average + max pooling ----
    s_gap = jnp.sum(fea_U, axis=0, keepdims=True) * (1.0 / float(HW))  # [1, C]
    s_gmp = jnp.max(fea_U, axis=0, keepdims=True)                      # [1, C]

    # ---- squeeze + excite, collapsed to 2 tiny matmuls (exact algebra) ----
    #   z_gap + z_gmp = (s_gap + s_gmp) @ Wfc + 2*bfc
    z = jnp.dot(s_gap + s_gmp, wfc_ref[...],
                preferred_element_type=jnp.float32) + bias_ref[1:2, :Dd]   # [1, D]
    #   [a0 | a1] = z @ [Wfcs0 | Wfcs1] + 2*[bfcs0 | bfcs1]
    a = jnp.dot(z, wfcs_ref[...],
                preferred_element_type=jnp.float32) + bias_ref[2:3, :]     # [1, 2C]

    # ---- softmax over the two branches (per channel) ----
    a0 = a[:, :C]
    a1 = a[:, C:]
    mx = jnp.maximum(a0, a1)
    e0 = jnp.exp(a0 - mx)
    e1 = jnp.exp(a1 - mx)
    inv = pl.reciprocal(e0 + e1, approx=True)         # EUP slot
    att0 = e0 * inv                                   # [1, C]
    att1 = e1 * inv                                   # [1, C]

    # ---- attention-weighted fuse ----
    out_ref[...] = fea0 * att0 + fea1 * att1          # [HW, C]


def fold_params(p):
    """Fold eval-mode BN into the conv weights and pack biases for the kernel."""
    C = FEATURES
    d = p["wfc"].shape[1]
    assert d <= 2 * C, "bias packing assumes D <= 2*C"

    scale = p["bn_g"] / jnp.sqrt(p["bn_v"] + EPS)               # [M, C]

    # branch 0: 1x1 conv, BN folded
    w1f = p["w1"] * scale[0][None, :]                           # [C, C]
    b1f = (p["b1"][0] - p["bn_m"][0]) * scale[0] + p["bn_b"][0]  # [C]
    # branch 1: 3x3 conv, BN folded
    w3f = p["w3"].reshape(9 * C, C) * scale[1][None, :]         # [9C, C]
    b3f = (p["b3"][0] - p["bn_m"][1]) * scale[1] + p["bn_b"][1]  # [C]

    wconv = jnp.zeros((9 * C, 2 * C), jnp.float32)
    wconv = wconv.at[4 * C:5 * C, :C].set(w1f)                  # 1x1 = centre tap only
    wconv = wconv.at[:, C:].set(w3f)                            # 3x3 = all 9 taps

    bias_conv = jnp.concatenate([b1f, b3f])                     # [2C]
    bias_fc2 = jnp.pad(2.0 * p["bfc"][0], (0, 2 * C - d))       # [2C] (zero padded)
    bias_fcs2 = 2.0 * jnp.concatenate([p["bfcs"][0], p["bfcs"][1]])  # [2C]
    bias = jnp.stack([bias_conv, bias_fc2, bias_fcs2], axis=0)  # [3, 2C]

    wfcs = jnp.concatenate([p["wfcs"][0], p["wfcs"][1]], axis=1)  # [D, 2C]

    return {"wconv": wconv.astype(jnp.float32),
            "wfc": p["wfc"].astype(jnp.float32),
            "wfcs": wfcs.astype(jnp.float32),
            "bias": bias.astype(jnp.float32)}


def skconv_forward(x_nchw, kp):
    """x_nchw: [1, C, H, W] float32 -> [1, C, H-2, W-2] float32."""
    N, C, H, W = x_nchw.shape
    assert N == 1 and C == FEATURES and H == WH and W == WH

    # glue: NCHW -> HWC, zero-pad, im2col with taps concatenated on the lane axis
    x_hwc = jnp.transpose(x_nchw[0], (1, 2, 0))                  # [H, W, C]
    x_pad = jnp.pad(x_hwc, ((1, 1), (1, 1), (0, 0)))             # [H+2, W+2, C]
    xcat = jnp.concatenate(
        [x_pad[ky:ky + H, kx:kx + W, :] for ky in range(3) for kx in range(3)],
        axis=-1).reshape(H * W, 9 * C).astype(jnp.float32)       # [HW, 9C]

    vspec = lambda: pl.BlockSpec(memory_space=pltpu.MemorySpace.VMEM)
    fea_v_flat = pl.pallas_call(
        skconv_kernel,
        out_shape=jax.ShapeDtypeStruct((H * W, C), jnp.float32),
        in_specs=[vspec() for _ in range(5)],
        out_specs=vspec(),
    )(xcat, kp["wconv"], kp["wfc"], kp["wfcs"], kp["bias"])

    # glue: crop [:, :, 1:-1, 1:-1] and return NCHW
    fea_v = fea_v_flat.reshape(H, W, C)[1:-1, 1:-1, :]
    return jnp.transpose(fea_v, (2, 0, 1))[None]                 # [1, C, H-2, W-2]


def reference(x_nchw, p):
    """Pure-JAX reference (lax.conv based) mirroring the PyTorch forward."""
    C = FEATURES
    hp = jax.lax.Precision.HIGHEST
    dn = ("NCHW", "OIHW", "NCHW")

    def bn(y, m):
        g = p["bn_g"][m].reshape(1, C, 1, 1)
        b = p["bn_b"][m].reshape(1, C, 1, 1)
        mu = p["bn_m"][m].reshape(1, C, 1, 1)
        v = p["bn_v"][m].reshape(1, C, 1, 1)
        return (y - mu) / jnp.sqrt(v + EPS) * g + b

    w1_oihw = p["w1"].T[:, :, None, None]
    y0 = jax.lax.conv_general_dilated(x_nchw, w1_oihw, (1, 1), "VALID",
                                      dimension_numbers=dn, precision=hp)
    fea0 = jnp.maximum(bn(y0 + p["b1"].reshape(1, C, 1, 1), 0), 0.0)

    w3_oihw = jnp.transpose(p["w3"].reshape(3, 3, C, C), (3, 2, 0, 1))
    y1 = jax.lax.conv_general_dilated(x_nchw, w3_oihw, (1, 1),
                                      ((1, 1), (1, 1)),
                                      dimension_numbers=dn, precision=hp)
    fea1 = jnp.maximum(bn(y1 + p["b3"].reshape(1, C, 1, 1), 1), 0.0)

    fea_U = fea0 + fea1
    s_gap = jnp.mean(fea_U, axis=(2, 3))                        # [1, C]
    s_gmp = jnp.max(fea_U, axis=(2, 3))                         # [1, C]
    z_gap = s_gap @ p["wfc"] + p["bfc"]
    z_gmp = s_gmp @ p["wfc"] + p["bfc"]
    atts = []
    for m in range(M):
        a = (z_gap @ p["wfcs"][m] + p["bfcs"][m]) + \
            (z_gmp @ p["wfcs"][m] + p["bfcs"][m])
        atts.append(a)
    a = jnp.stack(atts, axis=1)                                 # [1, M, C]
    w = jax.nn.softmax(a, axis=1)
    fea_v = (fea0 * w[:, 0][:, :, None, None]
             + fea1 * w[:, 1][:, :, None, None])
    return fea_v[:, :, 1:-1, 1:-1]


def make_params(key):
    C, d = FEATURES, D
    ks = jax.random.split(key, 12)
    f32 = jnp.float32
    p = {
        "w1":   0.1 * jax.random.normal(ks[0], (C, C), f32),        # (cin, cout)
        "b1":   0.1 * jax.random.normal(ks[1], (1, C), f32),
        "w3":   0.1 * jax.random.normal(ks[2], (9, C, C), f32),     # (tap, cin, cout)
        "b3":   0.1 * jax.random.normal(ks[3], (1, C), f32),
        "bn_g": 1.0 + 0.1 * jax.random.normal(ks[4], (M, C), f32),
        "bn_b": 0.1 * jax.random.normal(ks[5], (M, C), f32),
        "bn_m": 0.1 * jax.random.normal(ks[6], (M, C), f32),
        "bn_v": 1.0 + 0.1 * jnp.abs(jax.random.normal(ks[7], (M, C), f32)),
        "wfc":  0.1 * jax.random.normal(ks[8], (C, d), f32),        # (in, out)
        "bfc":  0.1 * jax.random.normal(ks[9], (1, d), f32),
        "wfcs": 0.1 * jax.random.normal(ks[10], (M, d, C), f32),    # (m, in, out)
        "bfcs": 0.1 * jax.random.normal(ks[11], (M, C), f32),
    }
    return p


if __name__ == "__main__":
    key = jax.random.PRNGKey(0)
    kx, kprm = jax.random.split(key)
    x = jax.random.normal(kx, (1, FEATURES, WH, WH), jnp.float32)   # NCHW, batch=1
    params = make_params(kprm)

    kparams = fold_params(params)   # one-time host-side BN fold + weight packing

    out = jax.jit(skconv_forward)(x, kparams)
    out = jax.block_until_ready(out)
    assert out.shape == (1, FEATURES, WH - 2, WH - 2), out.shape

    ref = jax.block_until_ready(reference(x, params))
    np.testing.assert_allclose(np.asarray(out), np.asarray(ref),
                               rtol=1e-2, atol=1e-2)
    print("KERNEL_OK")
</pallas_src>

<mosaic_0001>
module attributes {stable_mosaic.version = 11 : i64} {
  func.func @skconv_kernel(%arg0: memref<256x288xf32, #tpu.memory_space<vmem>>, %arg1: memref<288x64xf32, #tpu.memory_space<vmem>>, %arg2: memref<32x32xf32, #tpu.memory_space<vmem>>, %arg3: memref<32x64xf32, #tpu.memory_space<vmem>>, %arg4: memref<3x64xf32, #tpu.memory_space<vmem>>, %arg5: memref<256x32xf32, #tpu.memory_space<vmem>>) attributes {dimension_semantics = [], scalar_prefetch = 0 : i64, scratch_operands = 0 : i64, tpu.core_type = #tpu.core_type<tc>} {
    %c0 = arith.constant 0 : index
    %c0_0 = arith.constant 0 : index
    %0 = vector.load %arg0[%c0, %c0_0] : memref<256x288xf32, #tpu.memory_space<vmem>>, vector<256x288xf32>
    %c0_1 = arith.constant 0 : index
    %c0_2 = arith.constant 0 : index
    %1 = vector.load %arg1[%c0_1, %c0_2] : memref<288x64xf32, #tpu.memory_space<vmem>>, vector<288x64xf32>
    %cst = arith.constant dense<0.000000e+00> : vector<256x64xf32>
    %2 = tpu.matmul %0, %1, %cst {dimension_numbers = #tpu.dot_dimension_numbers<[1], [0], [0], [1], [0, 0, 1, 1], [], []>} : vector<256x288xf32>, vector<288x64xf32>, vector<256x64xf32> -> vector<256x64xf32>
    %c0_3 = arith.constant 0 : index
    %c0_4 = arith.constant 0 : index
    %3 = vector.load %arg4[%c0_3, %c0_4] : memref<3x64xf32, #tpu.memory_space<vmem>>, vector<1x64xf32>
    %4 = vector.broadcast %3 : vector<1x64xf32> to vector<256x64xf32>
    %5 = arith.addf %2, %4 : vector<256x64xf32>
    %cst_5 = arith.constant 0.000000e+00 : f32
    %6 = vector.broadcast %cst_5 : f32 to vector<256x64xf32>
    %7 = arith.maximumf %5, %6 : vector<256x64xf32>
    %8 = vector.extract_strided_slice %7 {offsets = [0, 0], sizes = [256, 32], strides = [1, 1]} : vector<256x64xf32> to vector<256x32xf32>
    %9 = vector.extract_strided_slice %7 {offsets = [0, 32], sizes = [256, 32], strides = [1, 1]} : vector<256x64xf32> to vector<256x32xf32>
    %10 = arith.addf %8, %9 : vector<256x32xf32>
    %cst_6 = arith.constant dense<0.000000e+00> : vector<32xf32>
    %11 = vector.multi_reduction <add>, %10, %cst_6 [0] : vector<256x32xf32> to vector<32xf32>
    %12 = vector.shape_cast %11 : vector<32xf32> to vector<1x32xf32>
    %cst_7 = arith.constant 3.906250e-03 : f32
    %13 = vector.broadcast %cst_7 : f32 to vector<1x32xf32>
    %14 = arith.mulf %12, %13 : vector<1x32xf32>
    %cst_8 = arith.constant dense<0xFF800000> : vector<32xf32>
    %15 = vector.multi_reduction <maximumf>, %10, %cst_8 [0] : vector<256x32xf32> to vector<32xf32>
    %16 = vector.shape_cast %15 : vector<32xf32> to vector<1x32xf32>
    %17 = arith.addf %14, %16 : vector<1x32xf32>
    %c0_9 = arith.constant 0 : index
    %c0_10 = arith.constant 0 : index
    %18 = vector.load %arg2[%c0_9, %c0_10] : memref<32x32xf32, #tpu.memory_space<vmem>>, vector<32x32xf32>
    %cst_11 = arith.constant dense<0.000000e+00> : vector<1x32xf32>
    %19 = tpu.matmul %17, %18, %cst_11 {dimension_numbers = #tpu.dot_dimension_numbers<[1], [0], [0], [1], [0, 0, 1, 1], [], []>} : vector<1x32xf32>, vector<32x32xf32>, vector<1x32xf32> -> vector<1x32xf32>
    %c1 = arith.constant 1 : index
    %c0_12 = arith.constant 0 : index
    %20 = vector.load %arg4[%c1, %c0_12] : memref<3x64xf32, #tpu.memory_space<vmem>>, vector<1x32xf32>
    %21 = arith.addf %19, %20 : vector<1x32xf32>
    %c0_13 = arith.constant 0 : index
    %c0_14 = arith.constant 0 : index
    %22 = vector.load %arg3[%c0_13, %c0_14] : memref<32x64xf32, #tpu.memory_space<vmem>>, vector<32x64xf32>
    %cst_15 = arith.constant dense<0.000000e+00> : vector<1x64xf32>
    %23 = tpu.matmul %21, %22, %cst_15 {dimension_numbers = #tpu.dot_dimension_numbers<[1], [0], [0], [1], [0, 0, 1, 1], [], []>} : vector<1x32xf32>, vector<32x64xf32>, vector<1x64xf32> -> vector<1x64xf32>
    %c2 = arith.constant 2 : index
    %c0_16 = arith.constant 0 : index
    %24 = vector.load %arg4[%c2, %c0_16] : memref<3x64xf32, #tpu.memory_space<vmem>>, vector<1x64xf32>
    %25 = arith.addf %23, %24 : vector<1x64xf32>
    %26 = vector.extract_strided_slice %25 {offsets = [0, 0], sizes = [1, 32], strides = [1, 1]} : vector<1x64xf32> to vector<1x32xf32>
    %27 = vector.extract_strided_slice %25 {offsets = [0, 32], sizes = [1, 32], strides = [1, 1]} : vector<1x64xf32> to vector<1x32xf32>
    %28 = arith.maximumf %26, %27 : vector<1x32xf32>
    %29 = arith.subf %26, %28 : vector<1x32xf32>
    %30 = math.exp %29 : vector<1x32xf32>
    %31 = arith.subf %27, %28 : vector<1x32xf32>
    %32 = math.exp %31 : vector<1x32xf32>
    %33 = arith.addf %30, %32 : vector<1x32xf32>
    %34 = tpu.reciprocal %33 {approx = true} : vector<1x32xf32> -> vector<1x32xf32>
    %35 = arith.mulf %30, %34 : vector<1x32xf32>
    %36 = arith.mulf %32, %34 : vector<1x32xf32>
    %37 = vector.broadcast %35 : vector<1x32xf32> to vector<256x32xf32>
    %38 = arith.mulf %8, %37 : vector<256x32xf32>
    %39 = vector.broadcast %36 : vector<1x32xf32> to vector<256x32xf32>
    %40 = arith.mulf %9, %39 : vector<256x32xf32>
    %41 = arith.addf %38, %40 : vector<256x32xf32>
    %c0_17 = arith.constant 0 : index
    %c0_18 = arith.constant 0 : index
    %42 = vector.load %arg5[%c0_17, %c0_18] : memref<256x32xf32, #tpu.memory_space<vmem>>, vector<256x32xf32>
    tpu.vector_store %arg5[%c0_17, %c0_18], %41 {strides = array<i32>} : memref<256x32xf32, #tpu.memory_space<vmem>>, vector<256x32xf32>,
    return
  }
}

</mosaic_0001>

<bundles_post_ra>
// kernel: skconv_forward.1
= control target key start
LH: loop header
LB: loop body
LE: loop exit
PB: predicated region body
PF: predicated region fallthrough
CT: control target
= control target key end

     0   :  { %vm154_vm0 = vcmask 261120   ;;  %s1346_s9 = smov 96   ;;  %s2582_s1 = inlined_call_operand.vmem [shape: f32[288,64], index: 1, kind: input, shape index: {}]   ;;  %s2583_s0 = inlined_call_operand.vmem [shape: f32[256,288], index: 0, kind: input, shape index: {}]   ;;  %s2584_s4 = inlined_call_operand.vmem [shape: f32[3,64], index: 4, kind: input, shape index: {}]   ;;  %s2585_s2 = inlined_call_operand.vmem [shape: f32[32,32], index: 2, kind: input, shape index: {}]   ;;  %s2586_s3 = inlined_call_operand.vmem [shape: f32[32,64], index: 3, kind: input, shape index: {}]   ;;  %s2587_s5 = inlined_call_operand.vmem [shape: f32[256,32], index: 5, kind: output, shape index: {}]  }
   0x1   :  { %v131_v0 = vld [vmem:[%s2582_s1 + $0x78] sm:$0xff]  ;;  %v130_v2 = vld [vmem:[%s2582_s1 + $0x70] sm:$0xff]  ;;  %v129_v5 = vld [vmem:[%s2582_s1 + $0x68] sm:$0xff] }
   0x2   :  { %v1384_v1 = vld [vmem:[%s2582_s1 + $0x118] sm:$0xff]  ;;  %251 = vmatpush.msra.mxu0 %v131_v0  ;;  %1301 = vmatpush.msra.mxu3 %v131_v0  ;;  %v1397_v4 = vld [vmem:[%s2582_s1 + $0x110] sm:$0xff]  ;;  %v1412_v7 = vld [vmem:[%s2582_s1 + $0x108] sm:$0xff] }
   0x3   :  { %v1392_v3 = vld [vmem:[%s2582_s1 + $0xf8] sm:$0xff]  ;;  %489 = vmatpush.msra.mxu2 %v1384_v1  ;;  %v1407_v6 = vld [vmem:[%s2582_s1 + $0xf0] sm:$0xff]  ;;  %v1417_v8 = vld [vmem:[%s2582_s1 + $0xe8] sm:$0xff] }
   0x4   :  { %364 = vmatpush.msra.mxu1 %v1392_v3  ;;  %252 = vmatpush.msra.mxu0 %v130_v2  ;;  %v128_v9 = vld [vmem:[%s2582_s1 + $0x60] sm:$0xff]  ;;  %v22_v12 = vld [vmem:[%s2583_s0 + $0x10] sm:$0xff]  ;;  %v127_v13 = vld [vmem:[%s2582_s1 + $0x58] sm:$0xff] }
   0x5   :  { %1302 = vmatpush.msra.mxu3 %v130_v2  ;;  %490 = vmatpush.msra.mxu2 %v1397_v4  ;;  %v1427_v10 = vld [vmem:[%s2582_s1 + $0x100] sm:$0xff]  ;;  %v1445_v14 = vld [vmem:[%s2582_s1 + $0xd8] sm:$0xff]  ;;  %v126_v15 = vld [vmem:[%s2582_s1 + $0x50] sm:$0xff] }
   0x6   :  { %365 = vmatpush.msra.mxu1 %v1407_v6  ;;  %253 = vmatpush.msra.mxu0 %v129_v5  ;;  %v1432_v11 = vld [vmem:[%s2582_s1 + $0xe0] sm:$0xff]  ;;  %v1456_v16 = vld [vmem:[%s2582_s1 + $0xd0] sm:$0xff]  ;;  %v125_v17 = vld [vmem:[%s2582_s1 + $0x48] sm:$0xff] }
   0x7   :  { %1303 = vmatpush.msra.mxu3 %v129_v5  ;;  %491 = vmatpush.msra.mxu2 %v1412_v7  ;;  %v1465_v18 = vld [vmem:[%s2582_s1 + $0xc8] sm:$0xff]  ;;  %v124_v19 = vld [vmem:[%s2582_s1 + $0x40] sm:$0xff]  ;;  %v123_v22 = vld [vmem:[%s2582_s1 + $0x38] sm:$0xff] }
   0x8   :  { %366 = vmatpush.msra.mxu1 %v1417_v8  ;;  %254 = vmatpush.msra.mxu0 %v128_v9  ;;  %v1474_v20 = vld [vmem:[%s2582_s1 + $0xc0] sm:$0xff]  ;;  %v25_v21 = vld [vmem:[%s2583_s0 + $0x28] sm:$0xff]  ;;  %v1486_v23 = vld [vmem:[%s2582_s1 + $0xb8] sm:$0xff] }
   0x9   :  { %1304 = vmatpush.msra.mxu3 %v128_v9  ;;  %492 = vmatpush.msra.mxu2 %v1427_v10  ;;  %v122_v24 = vld [vmem:[%s2582_s1 + $0x30] sm:$0xff]  ;;  %v121_v26 = vld [vmem:[%s2582_s1 + $0x28] sm:$0xff]  ;;  %v120_v28 = vld [vmem:[%s2582_s1 + $0x20] sm:$0xff] }
   0xa   :  { %367 = vmatpush.msra.mxu1 %v1432_v11  ;;  %1267 = vmatmul.msk.f32.vlgmr.msra.gmra.mxu2 %vm154_vm0, %v22_v12  ;;  %v1496_v25 = vld [vmem:[%s2582_s1 + $0xb0] sm:$0xff]  ;;  %v1505_v27 = vld [vmem:[%s2582_s1 + $0xa8] sm:$0xff]  ;;  %v1514_v29 = vld [vmem:[%s2582_s1 + $0xa0] sm:$0xff] }
   0xb   :  { %255 = vmatpush.msra.mxu0 %v127_v13  ;;  %1305 = vmatpush.msra.mxu3 %v127_v13  ;;  %v28_v30 = vld [vmem:[%s2583_s0 + $0x40] sm:$0xff]  ;;  %v119_v31 = vld [vmem:[%s2582_s1 + $0x18] sm:$0xff]  ;;  %v118_v33 = vld [vmem:[%s2582_s1 + $0x10] sm:$0xff] }
   0xc   :  { %368 = vmatpush.msra.mxu1 %v1445_v14  ;;  %v1526_v32 = vld [vmem:[%s2582_s1 + $0x98] sm:$0xff]  ;;  %v134_v34 = vld [vmem:[%s2582_s1 + $0x90] sm:$0xff]  ;;  %v117_v35 = vld [vmem:[%s2582_s1 + $0x8] sm:$0xff] }
   0xd   :  { %256 = vmatpush.msra.mxu0 %v126_v15  ;;  %1306 = vmatpush.msra.mxu3 %v126_v15  ;;  %v133_v36 = vld [vmem:[%s2582_s1 + $0x88] sm:$0xff]  ;;  %v116_v37 = vld [vmem:[%s2582_s1] sm:$0xff]  ;;  %v31_v40 = vld [vmem:[%s2583_s0 + $0x58] sm:$0xff] }
   0xe   :  { %369 = vmatpush.msra.mxu1 %v1456_v16  ;;  %v20_v38 = vld [vmem:[%s2583_s0] sm:$0xff]  ;;  %v21_v42 = vld [vmem:[%s2583_s0 + $0x8] sm:$0xff]  ;;  %v23_v43 = vld [vmem:[%s2583_s0 + $0x18] sm:$0xff] }
   0xf   :  { %257 = vmatpush.msra.mxu0 %v125_v17  ;;  %1307 = vmatpush.msra.mxu3 %v125_v17  ;;  %v92_v39 = vld [vmem:[%s2583_s0 + $0x240] sm:$0xff]  ;;  %v95_v44 = vld [vmem:[%s2583_s0 + $0x258] sm:$0xff]  ;;  %v34_v45 = vld [vmem:[%s2583_s0 + $0x70] sm:$0xff] }
  0x10   :  { %370 = vmatpush.msra.mxu1 %v1465_v18  ;;  %v132_v41 = vld [vmem:[%s2582_s1 + $0x80] sm:$0xff]  ;;  %v26_v47 = vld [vmem:[%s2583_s0 + $0x30] sm:$0xff]  ;;  %v37_v49 = vld [vmem:[%s2583_s0 + $0x88] sm:$0xff] }
  0x11   :  { %258 = vmatpush.msra.mxu0 %v124_v19  ;;  %1308 = vmatpush.msra.mxu3 %v124_v19  ;;  %v24_v46 = vld [vmem:[%s2583_s0 + $0x20] sm:$0xff]  ;;  %v98_v48 = vld [vmem:[%s2583_s0 + $0x270] sm:$0xff]  ;;  %v27_v50 = vld [vmem:[%s2583_s0 + $0x38] sm:$0xff] }
  0x12   :  { %371 = vmatpush.msra.mxu1 %v1474_v20  ;;  %1268 = vmatmul.msk.f32.gmra.mxu2 %vm154_vm0, %v25_v21  ;;  %v29_v51 = vld [vmem:[%s2583_s0 + $0x48] sm:$0xff]  ;;  %v40_v53 = vld [vmem:[%s2583_s0 + $0xa0] sm:$0xff]  ;;  %v30_v54 = vld [vmem:[%s2583_s0 + $0x50] sm:$0xff] }
  0x13   :  { %259 = vmatpush.msra.mxu0 %v123_v22  ;;  %1309 = vmatpush.msra.mxu3 %v123_v22  ;;  %v101_v52 = vld [vmem:[%s2583_s0 + $0x288] sm:$0xff]  ;;  %v32_v55 = vld [vmem:[%s2583_s0 + $0x60] sm:$0xff]  ;;  %v43_v57 = vld [vmem:[%s2583_s0 + $0xb8] sm:$0xff] }
  0x14   :  { %372 = vmatpush.msra.mxu1 %v1486_v23  ;;  %v104_v56 = vld [vmem:[%s2583_s0 + $0x2a0] sm:$0xff]  ;;  %v33_v58 = vld [vmem:[%s2583_s0 + $0x68] sm:$0xff]  ;;  %v35_v59 = vld [vmem:[%s2583_s0 + $0x78] sm:$0xff] }
  0x15   :  { %260 = vmatpush.msra.mxu0 %v122_v24  ;;  %1310 = vmatpush.msra.mxu3 %v122_v24  ;;  %v107_v60 = vld [vmem:[%s2583_s0 + $0x2b8] sm:$0xff]  ;;  %v46_v61 = vld [vmem:[%s2583_s0 + $0xd0] sm:$0xff]  ;;  %v36_v62 = vld [vmem:[%s2583_s0 + $0x80] sm:$0xff] }
  0x16   :  { %373 = vmatpush.msra.mxu1 %v1496_v25  ;;  %v38_v63 = vld [vmem:[%s2583_s0 + $0x90] sm:$0xff]  ;;  %v39_v2 = vld [vmem:[%s2583_s0 + $0x98] sm:$0xff]  ;;  %v52_v5 = vld [vmem:[%s2583_s0 + $0x100] sm:$0xff] }
  0x17   :  { %261 = vmatpush.msra.mxu0 %v121_v26  ;;  %1311 = vmatpush.msra.mxu3 %v121_v26  ;;  %v110_v0 = vld [vmem:[%s2583_s0 + $0x2d0] sm:$0xff]  ;;  %v55_v9 = vld [vmem:[%s2583_s0 + $0x118] sm:$0xff]  ;;  %v96_v12 = vld [vmem:[%s2583_s0 + $0x260] sm:$0xff] }
  0x18   :  { %374 = vmatpush.msra.mxu1 %v1505_v27  ;;  %v58_v13 = vld [vmem:[%s2583_s0 + $0x130] sm:$0xff]  ;;  %v61_v17 = vld [vmem:[%s2583_s0 + $0x148] sm:$0xff]  ;;  %v64_v21 = vld [vmem:[%s2583_s0 + $0x160] sm:$0xff] }
  0x19   :  { %262 = vmatpush.msra.mxu0 %v120_v28  ;;  %1312 = vmatpush.msra.mxu3 %v120_v28  ;;  %v50_v15 = vld [vmem:[%s2583_s0 + $0xf0] sm:$0xff]  ;;  %v53_v19 = vld [vmem:[%s2583_s0 + $0x108] sm:$0xff]  ;;  %v108_v28 = vld [vmem:[%s2583_s0 + $0x2c0] sm:$0xff] }
  0x1a   :  { %375 = vmatpush.msra.mxu1 %v1514_v29  ;;  %1269 = vmatmul.msk.f32.gmra.mxu2 %vm154_vm0, %v28_v30  ;;  %v54_v22 = vld [vmem:[%s2583_s0 + $0x110] sm:$0xff]  ;;  %v105_v24 = vld [vmem:[%s2583_s0 + $0x2a8] sm:$0xff]  ;;  %v60_v30 = vld [vmem:[%s2583_s0 + $0x140] sm:$0xff] }
  0x1b   :  { %263 = vmatpush.msra.mxu0 %v119_v31  ;;  %1313 = vmatpush.msra.mxu3 %v119_v31  ;;  %v57_v26 = vld [vmem:[%s2583_s0 + $0x128] sm:$0xff] }
  0x1c   :  { %376 = vmatpush.msra.mxu1 %v1526_v32 }
  0x1d   :  { %264 = vmatpush.msra.mxu0 %v118_v33  ;;  %1314 = vmatpush.msra.mxu3 %v118_v33  ;;  %v111_v33 = vld [vmem:[%s2583_s0 + $0x2d8] sm:$0xff] }
  0x1e   :  { %377 = vmatpush.msra.mxu1 %v134_v34 }
  0x1f   :  { %265 = vmatpush.msra.mxu0 %v117_v35  ;;  %1315 = vmatpush.msra.mxu3 %v117_v35  ;;  %v63_v35 = vld [vmem:[%s2583_s0 + $0x158] sm:$0xff] }
  0x20   :  { %378 = vmatpush.msra.mxu1 %v133_v36 }
  0x21   :  { %266 = vmatpush.msra.mxu0 %v116_v37  ;;  %1316 = vmatpush.msra.mxu3 %v116_v37  ;;  %v65_v37 = vld [vmem:[%s2583_s0 + $0x168] sm:$0xff] }
  0x22   :  { %267 = vmatmul.f32.vlgmr.msra.gmra.mxu0 %v20_v38  ;;  %339 = vmatmul.f32.vlgmr.msra.gmra.mxu3 %v92_v39  ;;  %v114_v38 = vld [vmem:[%s2583_s0 + $0x2f0] sm:$0xff]  ;;  %v76_v39 = vld [vmem:[%s2583_s0 + $0x1c0] sm:$0xff] }
  0x23   :  { %1270 = vmatmul.msk.f32.gmra.mxu2 %vm154_vm0, %v31_v40  ;;  %379 = vmatpush.msra.mxu1 %v132_v41  ;;  %v66_v40 = vld [vmem:[%s2583_s0 + $0x170] sm:$0xff] }
  0x24   :  { %1317 = vmatpush.msrb.mxu3 %v1392_v3  ;;  %380 = vmatmul.f32.vlgmr.msra.gmra.mxu1 %v21_v42  ;;  %v41_v3 = vld [vmem:[%s2583_s0 + $0xa8] sm:$0xff] }
  0x26   :  { %1318 = vmatpush.msrb.mxu3 %v1407_v6  ;;  %v42_v6 = vld [vmem:[%s2583_s0 + $0xb0] sm:$0xff] }
  0x28   :  { %1319 = vmatpush.msrb.mxu3 %v1417_v8  ;;  %v93_v8 = vld [vmem:[%s2583_s0 + $0x248] sm:$0xff] }
  0x2a   :  { %270 = vmatmul.f32.gmra.mxu0 %v23_v43  ;;  %1320 = vmatpush.msrb.mxu3 %v1432_v11  ;;  %v47_v11 = vld [vmem:[%s2583_s0 + $0xd8] sm:$0xff] }
  0x2b   :  { %342 = vmatmul.f32.gmra.mxu3 %v95_v44  ;;  %1271 = vmatmul.msk.f32.gmra.mxu2 %vm154_vm0, %v34_v45  ;;  %v68_v44 = vld [vmem:[%s2583_s0 + $0x180] sm:$0xff] }
  0x2c   :  { %1321 = vmatpush.msrb.mxu3 %v1445_v14  ;;  %383 = vmatmul.f32.gmra.mxu1 %v24_v46  ;;  %v48_v14 = vld [vmem:[%s2583_s0 + $0xe0] sm:$0xff]  ;;  %v79_v46 = vld [vmem:[%s2583_s0 + $0x1d8] sm:$0xff] }
  0x2e   :  { %1322 = vmatpush.msrb.mxu3 %v1456_v16  ;;  %v99_v16 = vld [vmem:[%s2583_s0 + $0x278] sm:$0xff] }
  0x30   :  { %1323 = vmatpush.msrb.mxu3 %v1465_v18  ;;  %v51_v18 = vld [vmem:[%s2583_s0 + $0xf8] sm:$0xff] }
  0x32   :  { %273 = vmatmul.f32.gmra.mxu0 %v26_v47  ;;  %1324 = vmatpush.msrb.mxu3 %v1474_v20  ;;  %v102_v20 = vld [vmem:[%s2583_s0 + $0x290] sm:$0xff]  ;;  %v103_v47 = vld [vmem:[%s2583_s0 + $0x298] sm:$0xff] }
  0x33   :  { %345 = vmatmul.f32.gmra.mxu3 %v98_v48  ;;  %1272 = vmatmul.msk.f32.gmra.mxu2 %vm154_vm0, %v37_v49  ;;  %v69_v49 = vld [vmem:[%s2583_s0 + $0x188] sm:$0xff] }
  0x34   :  { %1325 = vmatpush.msrb.mxu3 %v1486_v23  ;;  %386 = vmatmul.f32.gmra.mxu1 %v27_v50  ;;  %v56_v23 = vld [vmem:[%s2583_s0 + $0x120] sm:$0xff] }
  0x36   :  { %1326 = vmatpush.msrb.mxu3 %v1496_v25  ;;  %v67_v25 = vld [vmem:[%s2583_s0 + $0x178] sm:$0xff] }
  0x38   :  { %1327 = vmatpush.msrb.mxu3 %v1505_v27  ;;  %v59_v27 = vld [vmem:[%s2583_s0 + $0x138] sm:$0xff] }
  0x3a   :  { %276 = vmatmul.f32.gmra.mxu0 %v29_v51  ;;  %1328 = vmatpush.msrb.mxu3 %v1514_v29  ;;  %v70_v29 = vld [vmem:[%s2583_s0 + $0x190] sm:$0xff] }
  0x3b   :  { %348 = vmatmul.f32.gmra.mxu3 %v101_v52  ;;  %1273 = vmatmul.msk.f32.gmra.mxu2 %vm154_vm0, %v40_v53 }
  0x3c   :  { %1329 = vmatpush.msrb.mxu3 %v1526_v32  ;;  %389 = vmatmul.f32.gmra.mxu1 %v30_v54  ;;  %v62_v32 = vld [vmem:[%s2583_s0 + $0x150] sm:$0xff] }
  0x3e   :  { %1330 = vmatpush.msrb.mxu3 %v134_v34  ;;  %v73_v34 = vld [vmem:[%s2583_s0 + $0x1a8] sm:$0xff] }
  0x40   :  { %1331 = vmatpush.msrb.mxu3 %v133_v36 }
  0x42   :  { %279 = vmatmul.f32.gmra.mxu0 %v32_v55  ;;  %1332 = vmatpush.msrb.mxu3 %v132_v41  ;;  %v1777_v41 = vld [vmem:[%s2584_s4] ss:$0 sm:$0xff] }
  0x43   :  { %351 = vmatmul.f32.gmra.mxu3 %v104_v56  ;;  %1274 = vmatmul.msk.f32.gmra.mxu2 %vm154_vm0, %v43_v57  ;;  %v71_v56 = vld [vmem:[%s2583_s0 + $0x198] sm:$0xff] }
  0x44   :  { %1333 = vmatpush.msra.mxu3 %v1384_v1  ;;  %392 = vmatmul.f32.gmra.mxu1 %v33_v58  ;;  %v49_v1 = vld [vmem:[%s2583_s0 + $0xe8] sm:$0xff]  ;;  %v82_v58 = vld [vmem:[%s2583_s0 + $0x1f0] sm:$0xff] }
  0x46   :  { %1334 = vmatpush.msra.mxu3 %v1397_v4  ;;  %v113_v4 = vld [vmem:[%s2583_s0 + $0x2e8] sm:$0xff] }
  0x48   :  { %1335 = vmatpush.msra.mxu3 %v1412_v7  ;;  %v44_v7 = vld [vmem:[%s2583_s0 + $0xc0] sm:$0xff] }
  0x4a   :  { %282 = vmatmul.f32.gmra.mxu0 %v35_v59  ;;  %1336 = vmatpush.msra.mxu3 %v1427_v10  ;;  %v45_v10 = vld [vmem:[%s2583_s0 + $0xc8] sm:$0xff]  ;;  %v106_v59 = vld [vmem:[%s2583_s0 + $0x2b0] sm:$0xff] }
  0x4b   :  { %354 = vmatmul.f32.gmra.mxu3 %v107_v60  ;;  %1275 = vmatmul.msk.f32.gmra.mxu2 %vm154_vm0, %v46_v61  ;;  %v72_v61 = vld [vmem:[%s2583_s0 + $0x1a0] sm:$0xff] }
  0x4c   :  { %395 = vmatmul.f32.gmra.mxu1 %v36_v62 }
  0x52   :  { %285 = vmatmul.f32.gmra.mxu0 %v38_v63 }
  0x53   :  { %357 = vmatmul.f32.gmra.mxu3 %v110_v0  ;;  %1276 = vmatmul.msk.f32.gmra.mxu2 %vm154_vm0, %v49_v1 }
  0x54   :  { %398 = vmatmul.f32.gmra.mxu1 %v39_v2 }
  0x5a   :  { %288 = vmatmul.f32.gmra.mxu0 %v41_v3 }
  0x5b   :  { %360 = vmatmul.f32.gmra.mxu3 %v113_v4  ;;  %1277 = vmatmul.msk.f32.gmra.mxu2 %vm154_vm0, %v52_v5  ;;  %v74_v4 = vld [vmem:[%s2583_s0 + $0x1b0] sm:$0xff] }
  0x5c   :  { %401 = vmatmul.f32.gmra.mxu1 %v42_v6  ;;  %v85_v6 = vld [vmem:[%s2583_s0 + $0x208] sm:$0xff] }
  0x62   :  { %291 = vmatmul.f32.gmra.mxu0 %v44_v7  ;;  %v109_v7 = vld [vmem:[%s2583_s0 + $0x2c8] sm:$0xff] }
  0x63   :  { %452 = vmatmul.f32.vlgmr.msrb.gmra.mxu3 %v93_v8  ;;  %1278 = vmatmul.msk.f32.gmra.mxu2 %vm154_vm0, %v55_v9  ;;  %v75_v9 = vld [vmem:[%s2583_s0 + $0x1b8] sm:$0xff] }
  0x64   :  { %404 = vmatmul.f32.gmra.mxu1 %v45_v10 }
  0x6a   :  { %294 = vmatmul.f32.gmra.mxu0 %v47_v11 }
  0x6b   :  { %455 = vmatmul.f32.gmra.mxu3 %v96_v12  ;;  %1279 = vmatmul.msk.f32.gmra.mxu2 %vm154_vm0, %v58_v13 }
  0x6c   :  { %407 = vmatmul.f32.gmra.mxu1 %v48_v14 }
  0x72   :  { %297 = vmatmul.f32.gmra.mxu0 %v50_v15 }
  0x73   :  { %458 = vmatmul.f32.gmra.mxu3 %v99_v16  ;;  %1280 = vmatmul.msk.f32.gmra.mxu2 %vm154_vm0, %v61_v17  ;;  %v77_v16 = vld [vmem:[%s2583_s0 + $0x1c8] sm:$0xff] }
  0x74   :  { %410 = vmatmul.f32.gmra.mxu1 %v51_v18  ;;  %v88_v18 = vld [vmem:[%s2583_s0 + $0x220] sm:$0xff] }
  0x7a   :  { %300 = vmatmul.f32.gmra.mxu0 %v53_v19  ;;  %v112_v19 = vld [vmem:[%s2583_s0 + $0x2e0] sm:$0xff] }
  0x7b   :  { %461 = vmatmul.f32.gmra.mxu3 %v102_v20  ;;  %1281 = vmatmul.msk.f32.gmra.mxu2 %vm154_vm0, %v64_v21  ;;  %v78_v21 = vld [vmem:[%s2583_s0 + $0x1d0] sm:$0xff] }
  0x7c   :  { %413 = vmatmul.f32.gmra.mxu1 %v54_v22 }
  0x82   :  { %303 = vmatmul.f32.gmra.mxu0 %v56_v23 }
  0x83   :  { %464 = vmatmul.f32.gmra.mxu3 %v105_v24  ;;  %1282 = vmatmul.msk.f32.gmra.mxu2 %vm154_vm0, %v67_v25 }
  0x84   :  { %416 = vmatmul.f32.gmra.mxu1 %v57_v26 }
  0x8a   :  { %306 = vmatmul.f32.gmra.mxu0 %v59_v27 }
  0x8b   :  { %467 = vmatmul.f32.gmra.mxu3 %v108_v28  ;;  %1283 = vmatmul.msk.f32.gmra.mxu2 %vm154_vm0, %v70_v29  ;;  %v80_v28 = vld [vmem:[%s2583_s0 + $0x1e0] sm:$0xff] }
  0x8c   :  { %419 = vmatmul.f32.gmra.mxu1 %v60_v30  ;;  %v91_v30 = vld [vmem:[%s2583_s0 + $0x238] sm:$0xff] }
  0x8d   :  { %v494_v31 = vpop.f32.mrf.mxu2 }
  0x92   :  { %309 = vmatmul.f32.gmra.mxu0 %v62_v32 }
  0x93   :  { %470 = vmatmul.f32.gmra.mxu3 %v111_v33  ;;  %1284 = vmatmul.msk.f32.gmra.mxu2 %vm154_vm0, %v73_v34  ;;  %v81_v33 = vld [vmem:[%s2583_s0 + $0x1e8] sm:$0xff] }
  0x94   :  { %422 = vmatmul.f32.gmra.mxu1 %v63_v35 }
  0x95   :  { %v497_v36 = vpop.f32.mrf.mxu2 }
  0x9a   :  { %312 = vmatmul.f32.gmra.mxu0 %v65_v37 }
  0x9b   :  { %473 = vmatmul.f32.gmra.mxu3 %v114_v38  ;;  %1285 = vmatmul.msk.f32.gmra.mxu2 %vm154_vm0, %v76_v39 }
  0x9c   :  { %425 = vmatmul.f32.gmra.mxu1 %v66_v40  ;;  %v83_v40 = vld [vmem:[%s2583_s0 + $0x1f8] sm:$0xff] }
  0x9d   :  { %v500_v42 = vpop.f32.mrf.mxu2 }
  0x9f   :  { %v268_v43 = vpop.f32.mrf.mxu0 }
  0xa0   :  { %v269_v45 = vadd.f32 %v1777_v41, %v268_v43  ;;  %v94_v43 = vld [vmem:[%s2583_s0 + $0x250] sm:$0xff] }
  0xa1   :  { %v381_v48 = vpop.f32.mrf.mxu1 }
  0xa2   :  { %315 = vmatmul.f32.gmra.mxu0 %v68_v44  ;;  %v382_v50 = vadd.f32 %v381_v48, %v269_v45  ;;  %v84_v45 = vld [vmem:[%s2583_s0 + $0x200] sm:$0xff] }
  0xa3   :  { %1286 = vmatmul.msk.f32.gmra.mxu2 %vm154_vm0, %v79_v46  ;;  %1294 = vmatmul.msk.f32.vlgmr.msra.gmra.mxu3 %vm154_vm0, %v103_v47 }
  0xa4   :  { %v495_v51 = vadd.f32 %v494_v31, %v382_v50  ;;  %428 = vmatmul.f32.gmra.mxu1 %v69_v49  ;;  %v115_v31 = vld [vmem:[%s2583_s0 + $0x2f8] sm:$0xff] }
  0xa5   :  { %v1794_v52 = vpop.f32.mrf.mxu3 }
  0xa6   :  { %v503_v53 = vpop.f32.mrf.mxu2  ;;  %v1796_v54 = vmax.f32 %v495_v51, 0.0 }
  0xa7   :  { %v271_v55 = vpop.f32.mrf.mxu0 }
  0xa8   :  { %v272_v57 = vadd.f32 %v1777_v41, %v271_v55  ;;  %654 = vrot.lane.b32.xlu0 %v1796_v54, %s1346_s9 }
  0xa9   :  { %v384_v60 = vpop.f32.mrf.mxu1 }
  0xaa   :  { %318 = vmatmul.f32.gmra.mxu0 %v71_v56  ;;  %v385_v62 = vadd.f32 %v384_v60, %v272_v57  ;;  %v97_v56 = vld [vmem:[%s2583_s0 + $0x268] sm:$0xff] }
  0xab   :  { %1287 = vmatmul.msk.f32.gmra.mxu2 %vm154_vm0, %v82_v58  ;;  %1295 = vmatmul.msk.f32.gmra.mxu3 %vm154_vm0, %v106_v59  ;;  %v87_v58 = vld [vmem:[%s2583_s0 + $0x218] sm:$0xff] }
  0xac   :  { %v498_v63 = vadd.f32 %v497_v36, %v385_v62  ;;  %431 = vmatmul.f32.gmra.mxu1 %v72_v61 }
  0xae   :  { %v1815_v0 = vpop.f32.mrf.mxu3  ;;  %v506_v1 = vpop.f32.mrf.mxu2  ;;  %v1817_v2 = vmax.f32 %v498_v63, 0.0 }
  0xaf   :  { %v274_v3 = vpop.f32.mrf.mxu0 }
  0xb0   :  { %v275_v5 = vadd.f32 %v1777_v41, %v274_v3  ;;  %656 = vrot.lane.b32.xlu0 %v1817_v2, %s1346_s9  ;;  %v89_v3 = vld [vmem:[%s2583_s0 + $0x228] sm:$0xff] }
  0xb1   :  { %v387_v8 = vpop.f32.mrf.mxu1 }
  0xb2   :  { %321 = vmatmul.f32.gmra.mxu0 %v74_v4  ;;  %v388_v10 = vadd.f32 %v387_v8, %v275_v5  ;;  %v100_v5 = vld [vmem:[%s2583_s0 + $0x280] sm:$0xff] }
  0xb3   :  { %1288 = vmatmul.msk.f32.gmra.mxu2 %vm154_vm0, %v85_v6  ;;  %1296 = vmatmul.msk.f32.gmra.mxu3 %vm154_vm0, %v109_v7  ;;  %v90_v7 = vld [vmem:[%s2583_s0 + $0x230] sm:$0xff] }
  0xb4   :  { %v501_v11 = vadd.f32 %v500_v42, %v388_v10  ;;  %434 = vmatmul.f32.gmra.mxu1 %v75_v9 }
  0xb6   :  { %v1836_v12 = vpop.f32.mrf.mxu3  ;;  %v509_v13 = vpop.f32.mrf.mxu2  ;;  %v1838_v14 = vmax.f32 %v501_v11, 0.0 }
  0xb7   :  { %v277_v15 = vpop.f32.mrf.mxu0 }
  0xb8   :  { %v278_v17 = vadd.f32 %v1777_v41, %v277_v15  ;;  %658 = vrot.lane.b32.xlu1 %v1838_v14, %s1346_s9 }
  0xb9   :  { %v390_v20 = vpop.f32.mrf.mxu1 }
  0xba   :  { %324 = vmatmul.f32.gmra.mxu0 %v77_v16  ;;  %v391_v22 = vadd.f32 %v390_v20, %v278_v17 }
  0xbb   :  { %1289 = vmatmul.msk.f32.gmra.mxu2 %vm154_vm0, %v88_v18  ;;  %1297 = vmatmul.msk.f32.gmra.mxu3 %vm154_vm0, %v112_v19  ;;  %v341_v19 = vadd.f32 %v1777_v41, %v1794_v52 }
  0xbc   :  { %v504_v23 = vadd.f32 %v503_v53, %v391_v22  ;;  %437 = vmatmul.f32.gmra.mxu1 %v78_v21  ;;  %v86_v53 = vld [vmem:[%s2583_s0 + $0x210] sm:$0xff] }
  0xbe   :  { %v1857_v24 = vpop.f32.mrf.mxu3  ;;  %v512_v25 = vpop.f32.mrf.mxu2  ;;  %v1859_v26 = vmax.f32 %v504_v23, 0.0 }
  0xbf   :  { %v280_v27 = vpop.f32.mrf.mxu0 }
  0xc0   :  { %v281_v29 = vadd.f32 %v1777_v41, %v280_v27  ;;  %660 = vrot.lane.b32.xlu1 %v1859_v26, %s1346_s9 }
  0xc1   :  { %v393_v32 = vpop.f32.mrf.mxu1 }
  0xc2   :  { %327 = vmatmul.f32.gmra.mxu0 %v80_v28  ;;  %v394_v34 = vadd.f32 %v393_v32, %v281_v29 }
  0xc3   :  { %1290 = vmatmul.msk.f32.gmra.mxu2 %vm154_vm0, %v91_v30  ;;  %1298 = vmatmul.msk.f32.gmra.mxu3 %vm154_vm0, %v115_v31  ;;  %v344_v31 = vadd.f32 %v1777_v41, %v1815_v0 }
  0xc4   :  { %v507_v35 = vadd.f32 %v506_v1, %v394_v34  ;;  %440 = vmatmul.f32.gmra.mxu1 %v81_v33 }
  0xc6   :  { %v1878_v36 = vpop.f32.mrf.mxu3  ;;  %v515_v37 = vpop.f32.mrf.mxu2  ;;  %v1880_v38 = vmax.f32 %v507_v35, 0.0 }
  0xc7   :  { %v283_v39 = vpop.f32.mrf.mxu0 }
  0xc8   :  { %v284_v42 = vadd.f32 %v1777_v41, %v283_v39  ;;  %662 = vrot.lane.b32.xlu2 %v1880_v38, %s1346_s9 }
  0xc9   :  { %v396_v44 = vpop.f32.mrf.mxu1 }
  0xca   :  { %330 = vmatmul.f32.gmra.mxu0 %v83_v40  ;;  %v397_v46 = vadd.f32 %v396_v44, %v284_v42 }
  0xcb   :  { %1291 = vmatmul.msk.f32.gmra.mxu2 %vm154_vm0, %v94_v43  ;;  %v347_v43 = vadd.f32 %v1777_v41, %v1836_v12 }
  0xcc   :  { %v510_v47 = vadd.f32 %v509_v13, %v397_v46  ;;  %443 = vmatmul.f32.gmra.mxu1 %v84_v45 }
  0xce   :  { %v1895_v48 = vpop.f32.mrf.mxu3  ;;  %v518_v49 = vpop.f32.mrf.mxu2  ;;  %v1897_v50 = vmax.f32 %v510_v47, 0.0 }
  0xcf   :  { %v286_v51 = vpop.f32.mrf.mxu0 }
  0xd0   :  { %v287_v55 = vadd.f32 %v1777_v41, %v286_v51  ;;  %664 = vrot.lane.b32.xlu2 %v1897_v50, %s1346_s9 }
  0xd1   :  { %v399_v57 = vpop.f32.mrf.mxu1 }
  0xd2   :  { %333 = vmatmul.f32.gmra.mxu0 %v86_v53  ;;  %v400_v59 = vadd.f32 %v399_v57, %v287_v55 }
  0xd3   :  { %1292 = vmatmul.msk.f32.gmra.mxu2 %vm154_vm0, %v97_v56 }
  0xd4   :  { %v513_v60 = vadd.f32 %v512_v25, %v400_v59  ;;  %446 = vmatmul.f32.gmra.mxu1 %v87_v58 }
  0xd6   :  { %v1912_v61 = vpop.f32.mrf.mxu3  ;;  %v521_v62 = vpop.f32.mrf.mxu2  ;;  %v1914_v63 = vmax.f32 %v513_v60, 0.0 }
  0xd7   :  { %v289_v1 = vpop.f32.mrf.mxu0 }
  0xd8   :  { %v290_v4 = vadd.f32 %v1777_v41, %v289_v1  ;;  %666 = vrot.lane.b32.xlu0 %v1914_v63, %s1346_s9 }
  0xd9   :  { %v402_v6 = vpop.f32.mrf.mxu1 }
  0xda   :  { %336 = vmatmul.f32.gmra.mxu0 %v89_v3  ;;  %v403_v8 = vadd.f32 %v402_v6, %v290_v4 }
  0xdb   :  { %1293 = vmatmul.msk.f32.gmra.mxu2 %vm154_vm0, %v100_v5 }
  0xdc   :  { %v516_v9 = vadd.f32 %v515_v37, %v403_v8  ;;  %449 = vmatmul.f32.gmra.mxu1 %v90_v7 }
  0xde   :  { %v1929_v10 = vpop.f32.mrf.mxu3  ;;  %v524_v11 = vpop.f32.mrf.mxu2  ;;  %v1931_v13 = vmax.f32 %v516_v9, 0.0 }
  0xdf   :  { %v292_v15 = vpop.f32.mrf.mxu0 }
  0xe0   :  { %v293_v16 = vadd.f32 %v1777_v41, %v292_v15  ;;  %668 = vrot.lane.b32.xlu1 %v1931_v13, %s1346_s9 }
  0xe1   :  { %v405_v17 = vpop.f32.mrf.mxu1 }
  0xe2   :  { %v406_v18 = vadd.f32 %v405_v17, %v293_v16 }
  0xe4   :  { %v519_v20 = vadd.f32 %v518_v49, %v406_v18 }
  0xe6   :  { %v453_v21 = vpop.f32.mrf.mxu3  ;;  %v527_v22 = vpop.f32.mrf.mxu2  ;;  %v1938_v23 = vmax.f32 %v519_v20, 0.0 }
  0xe7   :  { %v1940_v25 = vadd.f32 %v453_v21, %v341_v19  ;;  %v295_v27 = vpop.f32.mrf.mxu0 }
  0xe8   :  { %v296_v28 = vadd.f32 %v1777_v41, %v295_v27  ;;  %670 = vrot.lane.b32.xlu2 %v1938_v23, %s1346_s9 }
  0xe9   :  { %v408_v29 = vpop.f32.mrf.mxu1 }
  0xea   :  { %v409_v30 = vadd.f32 %v408_v29, %v296_v28 }
  0xec   :  { %v522_v32 = vadd.f32 %v521_v62, %v409_v30 }
  0xee   :  { %v456_v52 = vpop.f32.mrf.mxu3  ;;  %v530_v33 = vpop.f32.mrf.mxu2  ;;  %v1947_v34 = vmax.f32 %v522_v32, 0.0 }
  0xef   :  { %v1949_v35 = vadd.f32 %v456_v52, %v344_v31  ;;  %v298_v37 = vpop.f32.mrf.mxu0 }
  0xf0   :  { %v299_v39 = vadd.f32 %v1777_v41, %v298_v37  ;;  %672 = vrot.lane.b32.xlu0 %v1947_v34, %s1346_s9 }
  0xf1   :  { %v411_v40 = vpop.f32.mrf.mxu1 }
  0xf2   :  { %v412_v42 = vadd.f32 %v411_v40, %v299_v39 }
  0xf4   :  { %v525_v44 = vadd.f32 %v524_v11, %v412_v42 }
  0xf6   :  { %v459_v0 = vpop.f32.mrf.mxu3  ;;  %v533_v45 = vpop.f32.mrf.mxu2  ;;  %v1956_v46 = vmax.f32 %v525_v44, 0.0 }
  0xf7   :  { %v1958_v47 = vadd.f32 %v459_v0, %v347_v43  ;;  %v301_v49 = vpop.f32.mrf.mxu0 }
  0xf8   :  { %v302_v51 = vadd.f32 %v1777_v41, %v301_v49  ;;  %674 = vrot.lane.b32.xlu1 %v1956_v46, %s1346_s9 }
  0xf9   :  { %v414_v53 = vpop.f32.mrf.mxu1 }
  0xfa   :  { %v415_v55 = vadd.f32 %v414_v53, %v302_v51 }
  0xfc   :  { %v528_v56 = vadd.f32 %v527_v22, %v415_v55 }
  0xfe   :  { %v536_v57 = vpop.f32.mrf.mxu2  ;;  %v1963_v58 = vmax.f32 %v528_v56, 0.0  ;;  %v1973_v11 = vpop.f32.mrf.mxu3 }
  0xff   :  { %v304_v12 = vpop.f32.mrf.mxu0 }
 0x100   :  { %v305_v59 = vadd.f32 %v1777_v41, %v304_v12  ;;  %676 = vrot.lane.b32.xlu2 %v1963_v58, %s1346_s9 }
 0x101   :  { %v417_v60 = vpop.f32.mrf.mxu1 }
 0x102   :  { %v418_v62 = vadd.f32 %v417_v60, %v305_v59 }
 0x104   :  { %v531_v1 = vadd.f32 %v530_v33, %v418_v62 }
 0x106   :  { %v539_v3 = vpop.f32.mrf.mxu2  ;;  %v1968_v4 = vmax.f32 %v531_v1, 0.0  ;;  %v1982_v29 = vpop.f32.mrf.mxu3 }
 0x107   :  { %v307_v5 = vpop.f32.mrf.mxu0 }
 0x108   :  { %v308_v6 = vadd.f32 %v1777_v41, %v307_v5  ;;  %678 = vrot.lane.b32.xlu0 %v1968_v4, %s1346_s9 }
 0x109   :  { %v420_v7 = vpop.f32.mrf.mxu1 }
 0x10a   :  { %v421_v8 = vadd.f32 %v420_v7, %v308_v6 }
 0x10c   :  { %v534_v9 = vadd.f32 %v533_v45, %v421_v8 }
 0x10e   :  { %v542_v15 = vpop.f32.mrf.mxu2  ;;  %v1975_v16 = vmax.f32 %v534_v9, 0.0  ;;  %v1992_v42 = vpop.f32.mrf.mxu3 }
 0x10f   :  { %v310_v17 = vpop.f32.mrf.mxu0 }
 0x110   :  { %v311_v18 = vadd.f32 %v1777_v41, %v310_v17  ;;  %680 = vrot.lane.b32.xlu1 %v1975_v16, %s1346_s9 }
 0x111   :  { %v423_v19 = vpop.f32.mrf.mxu1 }
 0x112   :  { %v424_v20 = vadd.f32 %v423_v19, %v311_v18 }
 0x114   :  { %v537_v21 = vadd.f32 %v536_v57, %v424_v20 }
 0x116   :  { %v545_v22 = vpop.f32.mrf.mxu2  ;;  %v1980_v27 = vmax.f32 %v537_v21, 0.0  ;;  %v1999_v57 = vpop.f32.mrf.mxu3 }
 0x117   :  { %v313_v28 = vpop.f32.mrf.mxu0 }
 0x118   :  { %v314_v30 = vadd.f32 %v1777_v41, %v313_v28  ;;  %682 = vrot.lane.b32.xlu2 %v1980_v27, %s1346_s9 }
 0x119   :  { %v426_v31 = vpop.f32.mrf.mxu1 }
 0x11a   :  { %v427_v32 = vadd.f32 %v426_v31, %v314_v30 }
 0x11c   :  { %v540_v52 = vadd.f32 %v539_v3, %v427_v32 }
 0x11e   :  { %v548_v33 = vpop.f32.mrf.mxu2  ;;  %v1987_v37 = vmax.f32 %v540_v52, 0.0  ;;  %v2006_v7 = vpop.f32.mrf.mxu3 }
 0x11f   :  { %v316_v39 = vpop.f32.mrf.mxu0 }
 0x120   :  { %2604 = vst [vmem:[#allocation2_spill] sm:$0xff] %v1987_v37  ;;  %v317_v40 = vadd.f32 %v1777_v41, %v316_v39  ;;  %684 = vrot.lane.b32.xlu0 %v1987_v37, %s1346_s9 }
 0x121   :  { %v429_v43 = vpop.f32.mrf.mxu1 }
 0x122   :  { %v430_v44 = vadd.f32 %v429_v43, %v317_v40 }
 0x124   :  { %v543_v0 = vadd.f32 %v542_v15, %v430_v44 }
 0x126   :  { %v551_v45 = vpop.f32.mrf.mxu2  ;;  %v1994_v49 = vmax.f32 %v543_v0, 0.0  ;;  %v575_v30 = vpop.f32.mrf.mxu3 }
 0x127   :  { %v319_v51 = vpop.f32.mrf.mxu0 }
 0x128   :  { %2605 = vst [vmem:[#allocation3_spill] sm:$0xff] %v1994_v49  ;;  %v320_v53 = vadd.f32 %v1777_v41, %v319_v51  ;;  %686 = vrot.lane.b32.xlu1 %v1994_v49, %s1346_s9 }
 0x129   :  { %v432_v55 = vpop.f32.mrf.mxu1 }
 0x12a   :  { %v433_v56 = vadd.f32 %v432_v55, %v320_v53 }
 0x12c   :  { %v546_v12 = vadd.f32 %v545_v22, %v433_v56 }
 0x12e   :  { %v554_v59 = vpop.f32.mrf.mxu2  ;;  %v2001_v60 = vmax.f32 %v546_v12, 0.0  ;;  %v578_v0 = vpop.f32.mrf.mxu3 }
 0x12f   :  { %v322_v62 = vpop.f32.mrf.mxu0 }
 0x130   :  { %v323_v1 = vadd.f32 %v1777_v41, %v322_v62  ;;  %688 = vrot.lane.b32.xlu2 %v2001_v60, %s1346_s9 }
 0x131   :  { %v435_v3 = vpop.f32.mrf.mxu1 }
 0x132   :  { %v436_v5 = vadd.f32 %v435_v3, %v323_v1 }
 0x134   :  { %v549_v6 = vadd.f32 %v548_v33, %v436_v5 }
 0x136   :  { %v557_v8 = vpop.f32.mrf.mxu2  ;;  %v2008_v9 = vmax.f32 %v549_v6, 0.0  ;;  %v581_v5 = vpop.f32.mrf.mxu3 }
 0x137   :  { %v325_v15 = vpop.f32.mrf.mxu0 }
 0x138   :  { %2606 = vst [vmem:[#allocation4_spill] sm:$0xff] %v2008_v9  ;;  %v326_v17 = vadd.f32 %v1777_v41, %v325_v15  ;;  %690 = vrot.lane.b32.xlu0 %v2008_v9, %s1346_s9 }
 0x139   :  { %v438_v18 = vpop.f32.mrf.mxu1 }
 0x13a   :  { %v439_v19 = vadd.f32 %v438_v18, %v326_v17 }
 0x13c   :  { %v552_v20 = vadd.f32 %v551_v45, %v439_v19  ;;  %v350_v19 = vadd.f32 %v1777_v41, %v1857_v24  ;;  %v353_v24 = vadd.f32 %v1777_v41, %v1878_v36 }
 0x13e   :  { %v560_v21 = vpop.f32.mrf.mxu2  ;;  %v2013_v22 = vmax.f32 %v552_v20, 0.0 }
 0x13f   :  { %v328_v28 = vpop.f32.mrf.mxu0 }
 0x140   :  { %2607 = vst [vmem:[#allocation5_spill] sm:$0xff] %v2013_v22  ;;  %v329_v31 = vadd.f32 %v1777_v41, %v328_v28  ;;  %692 = vrot.lane.b32.xlu1 %v2013_v22, %s1346_s9 }
 0x141   :  { %v441_v32 = vpop.f32.mrf.mxu1 }
 0x142   :  { %v442_v52 = vadd.f32 %v441_v32, %v329_v31 }
 0x144   :  { %v555_v33 = vadd.f32 %v554_v59, %v442_v52 }
 0x146   :  { %v563_v39 = vpop.f32.mrf.mxu2  ;;  %v2018_v40 = vmax.f32 %v555_v33, 0.0  ;;  %v584_v33 = vpop.f32.mrf.mxu3 }
 0x147   :  { %v331_v43 = vpop.f32.mrf.mxu0 }
 0x148   :  { %v332_v44 = vadd.f32 %v1777_v41, %v331_v43  ;;  %694 = vrot.lane.b32.xlu2 %v2018_v40, %s1346_s9 }
 0x149   :  { %v444_v45 = vpop.f32.mrf.mxu1 }
 0x14a   :  { %v445_v51 = vadd.f32 %v444_v45, %v332_v44  ;;  %v359_v45 = vadd.f32 %v1777_v41, %v1912_v61 }
 0x14c   :  { %v558_v53 = vadd.f32 %v557_v8, %v445_v51  ;;  %v472_v36 = vadd.f32 %v1999_v57, %v359_v45 }
 0x14e   :  { %v566_v55 = vpop.f32.mrf.mxu2  ;;  %v2023_v56 = vmax.f32 %v558_v53, 0.0  ;;  %v466_v53 = vadd.f32 %v1982_v29, %v353_v24  ;;  %v585_v61 = vadd.f32 %v584_v33, %v472_v36  ;;  %v362_v29 = vadd.f32 %v1777_v41, %v1929_v10  ;;  %v587_v57 = vpop.f32.mrf.mxu3 }
 0x14f   :  { %v334_v12 = vpop.f32.mrf.mxu0  ;;  %v567_v1 = vadd.f32 %v566_v55, %v1940_v25  ;;  %v463_v25 = vadd.f32 %v1973_v11, %v350_v19 }
 0x150   :  { %2608 = vst [vmem:[#allocation6_spill] sm:$0xff] %v2023_v56  ;;  %v335_v62 = vadd.f32 %v1777_v41, %v334_v12  ;;  %696 = vrot.lane.b32.xlu0 %v2023_v56, %s1346_s9 }
 0x151   :  { %v447_v59 = vpop.f32.mrf.mxu1  ;;  %v2029_v17 = vmax.f32 %v567_v1, 0.0  ;;  %v576_v32 = vadd.f32 %v575_v30, %v463_v25  ;;  %v663_v1 = vpop.permute.xlu2 %662 }
 0x152   :  { %v448_v3 = vadd.f32 %v447_v59, %v335_v62  ;;  %v2069_v62 = vmax.f32 %v585_v61, 0.0  ;;  %v2108_v33 = vadd.f32 %v663_v1, %v1880_v38 }
 0x153   :  { %2609 = vst [vmem:[#allocation7_spill] sm:$0xff] %v2029_v17  ;;  %v2050_v51 = vmax.f32 %v576_v32, 0.0 }
 0x154   :  { %v561_v6 = vadd.f32 %v560_v21, %v448_v3  ;;  %v789_v36 = vsel %vm154_vm0, %v2108_v33, 0.0 }
 0x156   :  { %v569_v15 = vpop.f32.mrf.mxu2  ;;  %v2031_v18 = vmax.f32 %v561_v6, 0.0 }
 0x157   :  { %v337_v8 = vpop.f32.mrf.mxu0  ;;  %v570_v28 = vadd.f32 %v569_v15, %v1949_v35  ;;  %v579_v35 = vadd.f32 %v578_v0, %v466_v53  ;;  %v475_v0 = vadd.f32 %v2006_v7, %v362_v29  ;;  %v659_v7 = vpop.permute.xlu1 %658 }
 0x158   :  { %v338_v20 = vadd.f32 %v1777_v41, %v337_v8  ;;  %698 = vrot.lane.b32.xlu1 %v2031_v18, %s1346_s9  ;;  %702 = vrot.lane.b32.xlu0 %v2029_v17, %s1346_s9  ;;  %v2094_v8 = vadd.f32 %v659_v7, %v1838_v14 }
 0x159   :  { %v450_v21 = vpop.f32.mrf.mxu1  ;;  %v2044_v43 = vmax.f32 %v570_v28, 0.0  ;;  %v2065_v55 = vmax.f32 %v579_v35, 0.0  ;;  %v665_v25 = vpop.permute.xlu2 %664 }
 0x15a   :  { %v451_v31 = vadd.f32 %v450_v21, %v338_v20  ;;  %v785_v28 = vsel %vm154_vm0, %v2094_v8, 0.0  ;;  %v2113_v35 = vadd.f32 %v665_v25, %v1897_v50 }
 0x15b   :  { %2610 = vst [vmem:[#allocation8_spill] sm:$0xff] %v2044_v43 }
 0x15c   :  { %v564_v52 = vadd.f32 %v563_v39, %v451_v31  ;;  %v356_v39 = vadd.f32 %v1777_v41, %v1895_v48  ;;  %v588_v48 = vadd.f32 %v587_v57, %v475_v0  ;;  %v791_v29 = vsel %vm154_vm0, %v2113_v35, 0.0 }
 0x15e   :  { %v2046_v44 = vmax.f32 %v564_v52, 0.0  ;;  %v572_v11 = vpop.f32.mrf.mxu2  ;;  %v469_v59 = vadd.f32 %v1992_v42, %v356_v39  ;;  %v655_v42 = vpop.permute.xlu0 %654 }
 0x15f   :  { %v573_v30 = vadd.f32 %v572_v11, %v1958_v47  ;;  %v2081_v47 = vmax.f32 %v588_v48, 0.0  ;;  %v661_v15 = vpop.permute.xlu1 %660 }
 0x160   :  { %700 = vrot.lane.b32.xlu2 %v2046_v44, %s1346_s9  ;;  %704 = vrot.lane.b32.xlu1 %v2044_v43, %s1346_s9  ;;  %v582_v41 = vadd.f32 %v581_v5, %v469_v59  ;;  %v2091_v5 = vadd.f32 %v655_v42, %v1796_v54  ;;  %v2099_v20 = vadd.f32 %v661_v15, %v1859_v26 }
 0x161   :  { %708 = vrot.lane.b32.xlu0 %v2050_v51, %s1346_s9  ;;  %v2067_v12 = vmax.f32 %v573_v30, 0.0  ;;  %v671_v11 = vpop.permute.xlu2 %670 }
 0x162   :  { %v2079_v10 = vmax.f32 %v582_v41, 0.0  ;;  %v782_v21 = vsel %vm154_vm0, %v2091_v5, 0.0  ;;  %v787_v32 = vsel %vm154_vm0, %v2099_v20, 0.0  ;;  %v2128_v1 = vadd.f32 %v671_v11, %v1938_v23 }
 0x163   :  { %2611 = vst [vmem:[#allocation9_spill] sm:$0xff] %v2067_v12 }
 0x164   :  { %v797_v25 = vsel %vm154_vm0, %v2128_v1, 0.0 }
 0x166   :  { %v657_v3 = vpop.permute.xlu0 %656 }
 0x167   :  { %v2088_v6 = vadd.f32 %v657_v3, %v1817_v2  ;;  %v669_v53 = vpop.permute.xlu1 %668 }
 0x168   :  { %706 = vrot.lane.b32.xlu2 %v2067_v12, %s1346_s9  ;;  %710 = vrot.lane.b32.xlu1 %v2065_v55, %s1346_s9  ;;  %v2119_v39 = vadd.f32 %v669_v53, %v1931_v13 }
 0x169   :  { %714 = vrot.lane.b32.xlu0 %v2069_v62, %s1346_s9  ;;  %v783_v19 = vsel %vm154_vm0, %v2088_v6, 0.0  ;;  %v677_v42 = vpop.permute.xlu2 %676 }
 0x16a   :  { %v784_v31 = vadd.f32 %v783_v19, %v782_v21  ;;  %v795_v41 = vsel %vm154_vm0, %v2119_v39, 0.0  ;;  %v2143_v11 = vadd.f32 %v677_v42, %v1963_v58 }
 0x16c   :  { %v786_v52 = vadd.f32 %v785_v28, %v784_v31 }
 0x16e   :  { %v788_v24 = vadd.f32 %v787_v32, %v786_v52  ;;  %v667_v45 = vpop.permute.xlu0 %666 }
 0x16f   :  { %v2116_v30 = vadd.f32 %v667_v45, %v1914_v63  ;;  %v675_v7 = vpop.permute.xlu1 %674 }
 0x170   :  { %712 = vrot.lane.b32.xlu2 %v2079_v10, %s1346_s9  ;;  %716 = vrot.lane.b32.xlu1 %v2081_v47, %s1346_s9  ;;  %v790_v61 = vadd.f32 %v789_v36, %v788_v24  ;;  %v2134_v19 = vadd.f32 %v675_v7, %v1956_v46 }
 0x171   :  { %v793_v57 = vsel %vm154_vm0, %v2116_v30, 0.0 }
 0x172   :  { %v792_v59 = vadd.f32 %v791_v29, %v790_v61  ;;  %v801_v32 = vsel %vm154_vm0, %v2134_v19, 0.0  ;;  %v683_v24 = vpop.permute.xlu2 %682  ;;  %v803_v29 = vsel %vm154_vm0, %v2143_v11, 0.0 }
 0x174   :  { %v794_v48 = vadd.f32 %v793_v57, %v792_v59 }
 0x176   :  { %v673_v0 = vpop.permute.xlu0 %672  ;;  %v796_v15 = vadd.f32 %v795_v41, %v794_v48  ;;  %v925_v41 = vld [vmem:[%s2585_s2 + $0x18] sm:$0xff] }
 0x177   :  { %v2131_v3 = vadd.f32 %v673_v0, %v1947_v34  ;;  %942 = vmatpush.msrb.mxu3 %v925_v41 }
 0x178   :  { %v798_v28 = vadd.f32 %v797_v25, %v796_v15  ;;  %v2161_v25 = vadd.f32 %v683_v24, %v1980_v27 }
 0x179   :  { %v799_v21 = vsel %vm154_vm0, %v2131_v3, 0.0 }
 0x17a   :  { %v800_v52 = vadd.f32 %v799_v21, %v798_v28 }
 0x17c   :  { %v802_v36 = vadd.f32 %v801_v32, %v800_v52  ;;  %v809_v32 = vsel %vm154_vm0, %v2161_v25, 0.0 }
 0x17e   :  { %v679_v31 = vpop.permute.xlu0 %678  ;;  %v804_v59 = vadd.f32 %v803_v29, %v802_v36 }
 0x17f   :  { %v2146_v53 = vadd.f32 %v679_v31, %v1968_v4 }
 0x181   :  { %v805_v57 = vsel %vm154_vm0, %v2146_v53, 0.0 }
 0x182   :  { %v681_v45 = vpop.permute.xlu1 %680  ;;  %v806_v42 = vadd.f32 %v805_v57, %v804_v59 }
 0x183   :  { %v2149_v61 = vadd.f32 %v681_v45, %v1975_v16 }
 0x185   :  { %v807_v48 = vsel %vm154_vm0, %v2149_v61, 0.0 }
 0x186   :  { %v808_v28 = vadd.f32 %v807_v48, %v806_v42 }
 0x188   :  { %v810_v45 = vadd.f32 %v809_v32, %v808_v28 }
 0x18a   :  { %v689_v7 = vpop.permute.xlu2 %688 }
 0x192   :  { %v685_v0 = vpop.permute.xlu0 %684 }
 0x193   :  { %v2164_v21 = vadd.f32 %v685_v0, %v1987_v37  ;;  %v2176_v0 = vadd.f32 %v689_v7, %v2001_v60  ;;  %v924_v7 = vld [vmem:[%s2585_s2 + $0x10] sm:$0xff] }
 0x194   :  { %943 = vmatpush.msrb.mxu3 %v924_v7 }
 0x195   :  { %v811_v52 = vsel %vm154_vm0, %v2164_v21, 0.0 }
 0x196   :  { %v812_v24 = vadd.f32 %v811_v52, %v810_v45 }
 0x19a   :  { %v687_v15 = vpop.permute.xlu1 %686 }
 0x19b   :  { %v2167_v31 = vadd.f32 %v687_v15, %v1994_v49  ;;  %v815_v15 = vsel %vm154_vm0, %v2176_v0, 0.0 }
 0x19d   :  { %v813_v29 = vsel %vm154_vm0, %v2167_v31, 0.0 }
 0x19e   :  { %v814_v48 = vadd.f32 %v813_v29, %v812_v24 }
 0x1a0   :  { %v816_v32 = vadd.f32 %v815_v15, %v814_v48 }
 0x1a2   :  { %v695_v57 = vpop.permute.xlu2 %694 }
 0x1a3   :  { %v2194_v24 = vadd.f32 %v695_v57, %v2018_v40 }
 0x1a5   :  { %v821_v48 = vsel %vm154_vm0, %v2194_v24, 0.0 }
 0x1aa   :  { %v691_v36 = vpop.permute.xlu0 %690 }
 0x1ab   :  { %v2179_v41 = vadd.f32 %v691_v36, %v2008_v9 }
 0x1ad   :  { %v817_v28 = vsel %vm154_vm0, %v2179_v41, 0.0 }
 0x1ae   :  { %v818_v36 = vadd.f32 %v817_v28, %v816_v32 }
 0x1b2   :  { %v693_v59 = vpop.permute.xlu1 %692 }
 0x1b3   :  { %v2182_v42 = vadd.f32 %v693_v59, %v2013_v22 }
 0x1b5   :  { %v819_v45 = vsel %vm154_vm0, %v2182_v42, 0.0 }
 0x1b6   :  { %v820_v9 = vadd.f32 %v819_v45, %v818_v36  ;;  %v856_v36 = vsel %vm154_vm0, %v2108_v33, -inf  ;;  %v854_v33 = vsel %vm154_vm0, %v2094_v8, -inf  ;;  %v855_v8 = vsel %vm154_vm0, %v2099_v20, -inf }
 0x1b7   :  { %v876_v20 = vsel %vm154_vm0, %v2161_v25, -inf }
 0x1b8   :  { %v822_v22 = vadd.f32 %v821_v48, %v820_v9 }
 0x1ba   :  { %v701_v29 = vpop.permute.xlu2 %700 }
 0x1bb   :  { %v2204_v49 = vadd.f32 %v701_v29, %v2046_v44 }
 0x1bd   :  { %v827_v9 = vsel %vm154_vm0, %v2204_v49, 0.0 }
 0x1c2   :  { %v697_v52 = vpop.permute.xlu0 %696  ;;  %v707_v7 = vpop.permute.xlu2 %706 }
 0x1c3   :  { %v2197_v59 = vadd.f32 %v697_v52, %v2023_v56 }
 0x1c5   :  { %v823_v15 = vsel %vm154_vm0, %v2197_v59, 0.0 }
 0x1c6   :  { %v824_v32 = vadd.f32 %v823_v15, %v822_v22  ;;  %v858_v22 = vsel %vm154_vm0, %v2113_v35, -inf }
 0x1ca   :  { %v699_v37 = vpop.permute.xlu1 %698  ;;  %v703_v57 = vpop.permute.xlu0 %702 }
 0x1cb   :  { %v2207_v28 = vadd.f32 %v699_v37, %v2031_v18  ;;  %v2216_v48 = vadd.f32 %v703_v57, %v2029_v17  ;;  %v852_v37 = vsel %vm154_vm0, %v2091_v5, -inf  ;;  %v862_v57 = vsel %vm154_vm0, %v2119_v39, -inf }
 0x1cc   :  { %v857_v15 = vmax.f32 %v852_v37, %v856_v36  ;;  %v866_v39 = vsel %vm154_vm0, %v2131_v3, -inf  ;;  %v922_v3 = vld [vmem:[%s2585_s2] sm:$0xff] }
 0x1cd   :  { %v825_v52 = vsel %vm154_vm0, %v2207_v28, 0.0  ;;  %v829_v5 = vsel %vm154_vm0, %v2216_v48, 0.0 }
 0x1ce   :  { %v826_v45 = vadd.f32 %v825_v52, %v824_v32  ;;  %v853_v32 = vsel %vm154_vm0, %v2088_v6, -inf  ;;  %v860_v52 = vsel %vm154_vm0, %v2116_v30, -inf  ;;  %v864_v30 = vsel %vm154_vm0, %v2128_v1, -inf  ;;  %v923_v1 = vld [vmem:[%s2585_s2 + $0x8] sm:$0xff] }
 0x1cf   :  { %v859_v6 = vmax.f32 %v853_v32, %v858_v22  ;;  %v861_v37 = vmax.f32 %v854_v33, %v860_v52  ;;  %944 = vmatpush.msrb.mxu3 %v923_v1  ;;  %v713_v52 = vpop.permute.xlu2 %712  ;;  %v886_v1 = vsel %vm154_vm0, %v2182_v42, -inf  ;;  %v896_v42 = vsel %vm154_vm0, %v2216_v48, -inf }
 0x1d0   :  { %v828_v29 = vadd.f32 %v827_v9, %v826_v45  ;;  %v2231_v45 = vadd.f32 %v707_v7, %v2067_v12  ;;  %v868_v7 = vsel %vm154_vm0, %v2134_v19, -inf  ;;  %v863_v12 = vmax.f32 %v855_v8, %v862_v57 }
 0x1d1   :  { %v872_v19 = vsel %vm154_vm0, %v2146_v53, -inf  ;;  %v867_v32 = vmax.f32 %v859_v6, %v866_v39  ;;  %v869_v33 = vmax.f32 %v861_v37, %v868_v7  ;;  %v882_v8 = vsel %vm154_vm0, %v2176_v0, -inf  ;;  %945 = vmatpush.msrb.mxu3 %v922_v3  ;;  %v952_v0 = vld [vmem:[%s2586_s3 + $0x10] sm:$0xff] }
 0x1d2   :  { %v705_v56 = vpop.permute.xlu1 %704  ;;  %v830_v9 = vadd.f32 %v829_v5, %v828_v29  ;;  %v874_v29 = vsel %vm154_vm0, %v2149_v61, -inf  ;;  %v878_v53 = vsel %vm154_vm0, %v2164_v21, -inf  ;;  %v880_v61 = vsel %vm154_vm0, %v2167_v31, -inf }
 0x1d3   :  { %v775_v35 = vadd.f32 %v705_v56, %v2044_v43  ;;  %v709_v36 = vpop.permute.xlu0 %708  ;;  %v870_v56 = vsel %vm154_vm0, %v2143_v11, -inf  ;;  %v833_v11 = vsel %vm154_vm0, %v2231_v45, 0.0  ;;  %v884_v21 = vsel %vm154_vm0, %v2179_v41, -inf }
 0x1d4   :  { %v777_v25 = vadd.f32 %v709_v36, %v2050_v51  ;;  %v871_v5 = vmax.f32 %v863_v12, %v870_v56  ;;  %v875_v36 = vmax.f32 %v867_v32, %v874_v29  ;;  %v953_v12 = vld [vmem:[%s2586_s3 + $0x18] sm:$0xff]  ;;  %v779_v31 = vadd.f32 %v713_v52, %v2079_v10 }
 0x1d5   :  { %v831_v17 = vsel %vm154_vm0, %v775_v35, 0.0  ;;  %970 = vmatpush.msra.mxu3 %v953_v12  ;;  %v890_v41 = vsel %vm154_vm0, %v2197_v59, -inf  ;;  %v892_v3 = vsel %vm154_vm0, %v2207_v28, -inf  ;;  %v900_v48 = vsel %vm154_vm0, %v2231_v45, -inf }
 0x1d6   :  { %v832_v22 = vadd.f32 %v831_v17, %v830_v9  ;;  %v865_v17 = vmax.f32 %v857_v15, %v864_v30  ;;  %v877_v9 = vmax.f32 %v869_v33, %v876_v20  ;;  %v888_v15 = vsel %vm154_vm0, %v2194_v24, -inf }
 0x1d7   :  { %v835_v30 = vsel %vm154_vm0, %v777_v25, 0.0  ;;  %v883_v24 = vmax.f32 %v875_v36, %v882_v8  ;;  %v879_v39 = vmax.f32 %v871_v5, %v878_v53  ;;  %971 = vmatpush.msra.mxu3 %v952_v0  ;;  %v839_v32 = vsel %vm154_vm0, %v779_v31, 0.0 }
 0x1d8   :  { %v834_v57 = vadd.f32 %v833_v11, %v832_v22  ;;  %v873_v43 = vmax.f32 %v865_v17, %v872_v19  ;;  %v951_v22 = vld [vmem:[%s2586_s3 + $0x8] sm:$0xff]  ;;  %v894_v11 = vsel %vm154_vm0, %v2204_v49, -inf  ;;  %v898_v33 = vsel %vm154_vm0, %v775_v35, -inf }
 0x1d9   :  { %972 = vmatpush.msra.mxu3 %v951_v22  ;;  %v887_v28 = vmax.f32 %v879_v39, %v886_v1  ;;  %v891_v52 = vmax.f32 %v883_v24, %v890_v41  ;;  %v902_v8 = vsel %vm154_vm0, %v777_v25, -inf  ;;  %v906_v25 = vsel %vm154_vm0, %v779_v31, -inf }
 0x1da   :  { %v711_v6 = vpop.permute.xlu1 %710  ;;  %v881_v7 = vmax.f32 %v873_v43, %v880_v61  ;;  %v836_v56 = vadd.f32 %v835_v30, %v834_v57  ;;  %v885_v43 = vmax.f32 %v877_v9, %v884_v21 }
 0x1db   :  { %v778_v37 = vadd.f32 %v711_v6, %v2065_v55  ;;  %v715_v20 = vpop.permute.xlu0 %714  ;;  %v895_v49 = vmax.f32 %v887_v28, %v894_v11  ;;  %v899_v9 = vmax.f32 %v891_v52, %v898_v33 }
 0x1dc   :  { %v889_v29 = vmax.f32 %v881_v7, %v888_v15  ;;  %v780_v59 = vadd.f32 %v715_v20, %v2069_v62  ;;  %v893_v57 = vmax.f32 %v885_v43, %v892_v3 }
 0x1dd   :  { %v837_v19 = vsel %vm154_vm0, %v778_v37, 0.0  ;;  %v904_v53 = vsel %vm154_vm0, %v778_v37, -inf  ;;  %v903_v12 = vmax.f32 %v895_v49, %v902_v8  ;;  %v907_v39 = vmax.f32 %v899_v9, %v906_v25  ;;  %v954_v49 = vld [vmem:[%s2584_s4 + $0x2] sm:$0x1] }
 0x1de   :  { %v838_v17 = vadd.f32 %v837_v19, %v836_v56  ;;  %v897_v61 = vmax.f32 %v889_v29, %v896_v42  ;;  %v841_v35 = vsel %vm154_vm0, %v780_v59, 0.0  ;;  %v908_v15 = vsel %vm154_vm0, %v780_v59, -inf }
 0x1df   :  { %v901_v21 = vmax.f32 %v893_v57, %v900_v48  ;;  %v950_v57 = vld [vmem:[%s2586_s3] sm:$0xff]  ;;  %s1347_s3 = smov 32  }
 0x1e0   :  { %v840_v5 = vadd.f32 %v839_v32, %v838_v17  ;;  %v905_v0 = vmax.f32 %v897_v61, %v904_v53  ;;  %973 = vmatpush.msra.mxu3 %v950_v57 }
 0x1e1   :  { %v909_v7 = vmax.f32 %v901_v21, %v908_v15 }
 0x1e2   :  { %v717_v36 = vpop.permute.xlu1 %716  ;;  %v842_v30 = vadd.f32 %v841_v35, %v840_v5  ;;  %v912_v20 = vmax.f32 %v905_v0, %v907_v39  ;;  %v926_v5 = vld [vmem:[%s2584_s4 + $0x1] sm:$0x1] }
 0x1e3   :  { %v781_v6 = vadd.f32 %v717_v36, %v2081_v47 }
 0x1e5   :  { %v843_v37 = vsel %vm154_vm0, %v781_v6, 0.0  ;;  %v910_v24 = vsel %vm154_vm0, %v781_v6, -inf }
 0x1e6   :  { %v844_v56 = vadd.f32 %v843_v37, %v842_v30  ;;  %v911_v45 = vmax.f32 %v903_v12, %v910_v24 }
 0x1e8   :  { %v845_v22 = vrot.slane %v844_v56, 4  ;;  %v913_v1 = vmax.f32 %v909_v7, %v911_v45 }
 0x1ea   :  { %v846_v41 = vadd.f32 %v845_v22, %v844_v56  ;;  %v914_v3 = vmax.f32 %v912_v20, %v913_v1 }
 0x1ec   :  { %v847_v19 = vrot.slane %v846_v41, 2  ;;  %v915_v29 = vrot.slane %v914_v3, 4 }
 0x1ee   :  { %v848_v43 = vadd.f32 %v847_v19, %v846_v41  ;;  %v916_v11 = vmax.f32 %v914_v3, %v915_v29 }
 0x1f0   :  { %v849_v17 = vrot.slane %v848_v43, 1  ;;  %v917_v32 = vrot.slane %v916_v11, 2 }
 0x1f2   :  { %v850_v31 = vadd.f32 %v849_v17, %v848_v43  ;;  %v918_v42 = vmax.f32 %v916_v11, %v917_v32 }
 0x1f4   :  { %v919_v33 = vrot.slane %v918_v42, 1  ;;  %v851_v59 = vmul.f32 0.00390625, %v850_v31 }
 0x1f6   :  { %v920_v28 = vmax.f32 %v918_v42, %v919_v33 }
 0x1f8   :  { %v921_v52 = vadd.f32 %v920_v28, %v851_v59 }
 0x1fa   :  { %1299 = vmatmul.msk.f32.vlgmr.msrb.gmra.mxu3 %vm154_vm0, %v921_v52  ;;  %v2612_v52 = vld [vmem:[#allocation3_spill] sm:$0xff] }
 0x27d   :  { %v947_v8 = vpop.f32.mrf.mxu3 }
 0x27e   :  { %v948_v53 = vadd.f32 %v947_v8, %v926_v5  ;;  %v2613_v5 = vld [vmem:[#allocation2_spill] sm:$0xff] }
 0x280   :  { %1300 = vmatmul.msk.f32.vlgmr.msra.gmra.mxu3 %vm154_vm0, %v948_v53 }
 0x303   :  { %v975_v61 = vpop.f32.mrf.mxu3 }
 0x304   :  { %v976_v9 = vadd.f32 %v975_v61, %v954_v49  ;;  %v2614_v49 = vld [vmem:[#allocation5_spill] sm:$0xff] }
 0x306   :  { %979 = vrot.lane.b32.xlu2 %v976_v9, %s1346_s9 }
 0x360   :  { %v980_v36 = vpop.permute.xlu2 %979 }
 0x361   :  { %v982_v48 = vmax.f32 %v976_v9, %v980_v36 }
 0x363   :  { %987 = vrot.lane.b32.xlu0 %v982_v48, %s1347_s3  ;;  %v983_v0 = vsub.f32 %v976_v9, %v982_v48 }
 0x365   :  { %v984_v21 = vmul.f32 1.442695, %v983_v0 }
 0x3d5   :  { %v988_v35 = vpop.permute.xlu0 %987 }
 0x3d6   :  { %v990_v15 = vsub.f32 %v976_v9, %v988_v35  ;;  %v2615_v9 = vld [vmem:[#allocation4_spill] sm:$0xff] }
 0x3d8   :  { %v991_v6 = vmul.f32 1.442695, %v990_v15  ;;  %v2616_v15 = vld [vmem:[#allocation6_spill] sm:$0xff] }
 0x3da   :  { %1340 = vpow2.f32 %v991_v6 }
 0x3db   :  { %1342 = vpow2.f32 %v984_v21  ;;  %v2618_v21 = vld [vmem:[#allocation8_spill] sm:$0xff] }
 0x3e0   :  { %v1341_v12 = vpop.eup %1340 }
 0x3e1   :  { %994 = vrot.lane.b32.xlu1 %v1341_v12, %s1346_s9  ;;  %v1343_v30 = vpop.eup %1342 }
 0x453   :  { %v995_v25 = vpop.permute.xlu1 %994 }
 0x454   :  { %v997_v37 = vadd.f32 %v1343_v30, %v995_v25  ;;  %v2619_v25 = vld [vmem:[#allocation7_spill] sm:$0xff] }
 0x456   :  { %1344 = vrcp.f32 %v997_v37 }
 0x45c   :  { %v1345_v24 = vpop.eup %1344 }
 0x45d   :  { %v2321_v39 = vmul.f32 %v1345_v24, %v1343_v30  ;;  %1001 = vrot.lane.b32.xlu2 %v1345_v24, %s1347_s3 }
 0x4b7   :  { %v1002_v7 = vpop.permute.xlu2 %1001 }
 0x4b8   :  { %v1004_v56 = vmul.f32 %v1341_v12, %v1002_v7  ;;  %v2617_v12 = vld [vmem:[#allocation9_spill] sm:$0xff] }
 0x4ba   :  { %v1038_v45 = vperm.slane %v1004_v56, 0 }
 0x4bc   :  { %v1041_v20 = vmul.f32 %v1038_v45, %v1838_v14  ;;  %v1040_v22 = vmul.f32 %v1038_v45, %v1817_v2  ;;  %v1039_v1 = vmul.f32 %v1038_v45, %v1796_v54  ;;  %v1044_v41 = vmul.f32 %v1038_v45, %v1897_v50 }
 0x4bd   :  { %v1043_v3 = vmul.f32 %v1038_v45, %v1880_v38  ;;  %v1042_v19 = vmul.f32 %v1038_v45, %v1859_v26  ;;  %v1047_v29 = vmul.f32 %v1038_v45, %v1938_v23  ;;  %v1046_v43 = vmul.f32 %v1038_v45, %v1931_v13 }
 0x4be   :  { %1107 = vrot.lane.b32.xlu2 %v1041_v20, %s1346_s9  ;;  %1105 = vrot.lane.b32.xlu1 %v1040_v22, %s1346_s9  ;;  %v1045_v11 = vmul.f32 %v1038_v45, %v1914_v63  ;;  %v1050_v17 = vmul.f32 %v1038_v45, %v1963_v58  ;;  %v1049_v32 = vmul.f32 %v1038_v45, %v1956_v46 }
 0x4bf   :  { %1103 = vrot.lane.b32.xlu0 %v1039_v1, %s1346_s9  ;;  %v1048_v31 = vmul.f32 %v1038_v45, %v1947_v34  ;;  %v1053_v42 = vmul.f32 %v1038_v45, %v1980_v27  ;;  %v1052_v33 = vmul.f32 %v1038_v45, %v1975_v16  ;;  %v1051_v59 = vmul.f32 %v1038_v45, %v1968_v4 }
 0x4c0   :  { %v1056_v28 = vmul.f32 %v1038_v45, %v2001_v60  ;;  %v1055_v57 = vmul.f32 %v1038_v45, %v2612_v52  ;;  %v1054_v8 = vmul.f32 %v1038_v45, %v2613_v5  ;;  %v1059_v53 = vmul.f32 %v1038_v45, %v2018_v40 }
 0x4c1   :  { %v1058_v61 = vmul.f32 %v1038_v45, %v2614_v49  ;;  %v1057_v36 = vmul.f32 %v1038_v45, %v2615_v9  ;;  %v1062_v48 = vmul.f32 %v1038_v45, %v2046_v44  ;;  %v1061_v35 = vmul.f32 %v1038_v45, %v2031_v18 }
 0x4c2   :  { %v1060_v6 = vmul.f32 %v1038_v45, %v2616_v15  ;;  %v1065_v0 = vmul.f32 %v1038_v45, %v2617_v12  ;;  %v1064_v30 = vmul.f32 %v1038_v45, %v2618_v21  ;;  %v1063_v37 = vmul.f32 %v1038_v45, %v2619_v25 }
 0x4c3   :  { %v1068_v24 = vmul.f32 %v1038_v45, %v2079_v10  ;;  %v1067_v7 = vmul.f32 %v1038_v45, %v2065_v55  ;;  %v1066_v56 = vmul.f32 %v1038_v45, %v2050_v51  ;;  %v1070_v20 = vmul.f32 %v1038_v45, %v2081_v47 }
 0x4c4   :  { %v1069_v22 = vmul.f32 %v1038_v45, %v2069_v62  ;;  %v2388_v1 = vperm.slane %v2321_v39, 0 }
 0x4c6   :  { %1113 = vrot.lane.b32.xlu2 %v1044_v41, %s1346_s9  ;;  %1111 = vrot.lane.b32.xlu1 %v1043_v3, %s1346_s9  ;;  %v1008_v41 = vmul.f32 %v2388_v1, %v1838_v14  ;;  %v1011_v45 = vmul.f32 %v2388_v1, %v1897_v50  ;;  %v1014_v14 = vmul.f32 %v2388_v1, %v1938_v23 }
 0x4c7   :  { %1109 = vrot.lane.b32.xlu0 %v1042_v19, %s1346_s9  ;;  %v1017_v50 = vmul.f32 %v2388_v1, %v1963_v58 }
 0x4ce   :  { %1119 = vrot.lane.b32.xlu2 %v1047_v29, %s1346_s9  ;;  %1117 = vrot.lane.b32.xlu1 %v1046_v43, %s1346_s9 }
 0x4cf   :  { %1115 = vrot.lane.b32.xlu0 %v1045_v11, %s1346_s9 }
 0x4d6   :  { %1125 = vrot.lane.b32.xlu2 %v1050_v17, %s1346_s9  ;;  %1123 = vrot.lane.b32.xlu1 %v1049_v32, %s1346_s9  ;;  %v1007_v17 = vmul.f32 %v2388_v1, %v1817_v2  ;;  %v1010_v2 = vmul.f32 %v2388_v1, %v1880_v38  ;;  %v1013_v38 = vmul.f32 %v2388_v1, %v1931_v13 }
 0x4d7   :  { %1121 = vrot.lane.b32.xlu0 %v1048_v31, %s1346_s9  ;;  %v1016_v13 = vmul.f32 %v2388_v1, %v1956_v46  ;;  %v1019_v46 = vmul.f32 %v2388_v1, %v1975_v16  ;;  %v1022_v16 = vmul.f32 %v2388_v1, %v2612_v52  ;;  %v1035_v52 = vmul.f32 %v2388_v1, %v2079_v10 }
 0x4d8   :  { %v1028_v10 = vmul.f32 %v2388_v1, %v2031_v18  ;;  %v1031_v18 = vmul.f32 %v2388_v1, %v2618_v21  ;;  %v1034_v21 = vmul.f32 %v2388_v1, %v2065_v55  ;;  %v1037_v55 = vmul.f32 %v2388_v1, %v2081_v47 }
 0x4de   :  { %1131 = vrot.lane.b32.xlu2 %v1053_v42, %s1346_s9  ;;  %1129 = vrot.lane.b32.xlu1 %v1052_v33, %s1346_s9  ;;  %v1006_v42 = vmul.f32 %v2388_v1, %v1796_v54  ;;  %v1020_v54 = vmul.f32 %v2388_v1, %v1980_v27 }
 0x4df   :  { %1127 = vrot.lane.b32.xlu0 %v1051_v59, %s1346_s9 }
 0x4e6   :  { %1137 = vrot.lane.b32.xlu2 %v1056_v28, %s1346_s9  ;;  %1135 = vrot.lane.b32.xlu1 %v1055_v57, %s1346_s9 }
 0x4e7   :  { %1133 = vrot.lane.b32.xlu0 %v1054_v8, %s1346_s9  ;;  %v1009_v8 = vmul.f32 %v2388_v1, %v1859_v26  ;;  %v1023_v26 = vmul.f32 %v2388_v1, %v2001_v60 }
 0x4ee   :  { %1143 = vrot.lane.b32.xlu2 %v1059_v53, %s1346_s9  ;;  %1141 = vrot.lane.b32.xlu1 %v1058_v61, %s1346_s9 }
 0x4ef   :  { %1139 = vrot.lane.b32.xlu0 %v1057_v36, %s1346_s9 }
 0x4f6   :  { %1149 = vrot.lane.b32.xlu2 %v1062_v48, %s1346_s9  ;;  %1147 = vrot.lane.b32.xlu1 %v1061_v35, %s1346_s9 }
 0x4f7   :  { %1145 = vrot.lane.b32.xlu0 %v1060_v6, %s1346_s9  ;;  %v1012_v6 = vmul.f32 %v2388_v1, %v1914_v63  ;;  %v1026_v63 = vmul.f32 %v2388_v1, %v2018_v40 }
 0x4fe   :  { %1155 = vrot.lane.b32.xlu2 %v1065_v0, %s1346_s9  ;;  %1153 = vrot.lane.b32.xlu1 %v1064_v30, %s1346_s9 }
 0x4ff   :  { %1151 = vrot.lane.b32.xlu0 %v1063_v37, %s1346_s9 }
 0x506   :  { %1161 = vrot.lane.b32.xlu2 %v1068_v24, %s1346_s9  ;;  %1159 = vrot.lane.b32.xlu1 %v1067_v7, %s1346_s9 }
 0x507   :  { %1157 = vrot.lane.b32.xlu0 %v1066_v56, %s1346_s9  ;;  %v1015_v56 = vmul.f32 %v2388_v1, %v1947_v34  ;;  %v1029_v34 = vmul.f32 %v2388_v1, %v2046_v44 }
 0x50e   :  { %1165 = vrot.lane.b32.xlu1 %v1070_v20, %s1346_s9 }
 0x50f   :  { %1163 = vrot.lane.b32.xlu0 %v1069_v22, %s1346_s9 }
 0x518   :  { %v1108_v3 = vpop.permute.xlu2 %1107 }
 0x519   :  { %v1201_v19 = vadd.f32 %v1108_v3, %v1008_v41 }
 0x51b   :  { %1233 = vst.msk [vmem:[%s2587_s5 + $0x10] sm:$0xff] %vm154_vm0, %v1201_v19 }
 0x520   :  { %v1114_v29 = vpop.permute.xlu2 %1113 }
 0x521   :  { %v1204_v43 = vadd.f32 %v1114_v29, %v1011_v45  ;;  %v1018_v45 = vmul.f32 %v2388_v1, %v1968_v4  ;;  %v1032_v4 = vmul.f32 %v2388_v1, %v2617_v12 }
 0x523   :  { %1236 = vst.msk [vmem:[%s2587_s5 + $0x28] sm:$0xff] %vm154_vm0, %v1204_v43 }
 0x528   :  { %v1120_v39 = vpop.permute.xlu2 %1119 }
 0x529   :  { %v1207_v11 = vadd.f32 %v1120_v39, %v1014_v14 }
 0x52b   :  { %1239 = vst.msk [vmem:[%s2587_s5 + $0x40] sm:$0xff] %vm154_vm0, %v1207_v11 }
 0x530   :  { %v1126_v32 = vpop.permute.xlu2 %1125  ;;  %v1106_v31 = vpop.permute.xlu1 %1105 }
 0x531   :  { %v1210_v33 = vadd.f32 %v1126_v32, %v1017_v50  ;;  %v1200_v23 = vadd.f32 %v1106_v31, %v1007_v17  ;;  %v1104_v59 = vpop.permute.xlu0 %1103  ;;  %v1021_v50 = vmul.f32 %v2388_v1, %v2613_v5  ;;  %v1025_v5 = vmul.f32 %v2388_v1, %v2614_v49 }
 0x532   :  { %v1199_v28 = vadd.f32 %v1104_v59, %v1006_v42 }
 0x533   :  { %1242 = vst.msk [vmem:[%s2587_s5 + $0x58] sm:$0xff] %vm154_vm0, %v1210_v33 }
 0x534   :  { %1232 = vst.msk [vmem:[%s2587_s5 + $0x8] sm:$0xff] %vm154_vm0, %v1200_v23  ;;  %v1024_v23 = vmul.f32 %v2388_v1, %v2615_v9  ;;  %v1027_v9 = vmul.f32 %v2388_v1, %v2616_v15  ;;  %v1030_v15 = vmul.f32 %v2388_v1, %v2619_v25  ;;  %v1033_v25 = vmul.f32 %v2388_v1, %v2050_v51 }
 0x535   :  { %1231 = vst.msk [vmem:[%s2587_s5] sm:$0xff] %vm154_vm0, %v1199_v28  ;;  %v1036_v51 = vmul.f32 %v2388_v1, %v2069_v62 }
 0x538   :  { %v1132_v58 = vpop.permute.xlu2 %1131  ;;  %v1112_v57 = vpop.permute.xlu1 %1111 }
 0x539   :  { %v1213_v53 = vadd.f32 %v1132_v58, %v1020_v54  ;;  %v1203_v61 = vadd.f32 %v1112_v57, %v1010_v2  ;;  %v1110_v36 = vpop.permute.xlu0 %1109 }
 0x53a   :  { %v1202_v48 = vadd.f32 %v1110_v36, %v1009_v8 }
 0x53b   :  { %1245 = vst.msk [vmem:[%s2587_s5 + $0x70] sm:$0xff] %vm154_vm0, %v1213_v53 }
 0x53c   :  { %1235 = vst.msk [vmem:[%s2587_s5 + $0x20] sm:$0xff] %vm154_vm0, %v1203_v61 }
 0x53d   :  { %1234 = vst.msk [vmem:[%s2587_s5 + $0x18] sm:$0xff] %vm154_vm0, %v1202_v48 }
 0x540   :  { %v1138_v27 = vpop.permute.xlu2 %1137  ;;  %v1118_v35 = vpop.permute.xlu1 %1117 }
 0x541   :  { %v1216_v0 = vadd.f32 %v1138_v27, %v1023_v26  ;;  %v1206_v30 = vadd.f32 %v1118_v35, %v1013_v38  ;;  %v1116_v37 = vpop.permute.xlu0 %1115 }
 0x542   :  { %v1205_v24 = vadd.f32 %v1116_v37, %v1012_v6 }
 0x543   :  { %1248 = vst.msk [vmem:[%s2587_s5 + $0x88] sm:$0xff] %vm154_vm0, %v1216_v0 }
 0x544   :  { %1238 = vst.msk [vmem:[%s2587_s5 + $0x38] sm:$0xff] %vm154_vm0, %v1206_v30 }
 0x545   :  { %1237 = vst.msk [vmem:[%s2587_s5 + $0x30] sm:$0xff] %vm154_vm0, %v1205_v24 }
 0x548   :  { %v1144_v60 = vpop.permute.xlu2 %1143  ;;  %v1124_v7 = vpop.permute.xlu1 %1123 }
 0x549   :  { %v1219_v20 = vadd.f32 %v1144_v60, %v1026_v63  ;;  %v1209_v22 = vadd.f32 %v1124_v7, %v1016_v13  ;;  %v1122_v41 = vpop.permute.xlu0 %1121 }
 0x54a   :  { %v1208_v3 = vadd.f32 %v1122_v41, %v1015_v56 }
 0x54b   :  { %1251 = vst.msk [vmem:[%s2587_s5 + $0xa0] sm:$0xff] %vm154_vm0, %v1219_v20 }
 0x54c   :  { %1241 = vst.msk [vmem:[%s2587_s5 + $0x50] sm:$0xff] %vm154_vm0, %v1209_v22 }
 0x54d   :  { %1240 = vst.msk [vmem:[%s2587_s5 + $0x48] sm:$0xff] %vm154_vm0, %v1208_v3 }
 0x550   :  { %v1150_v40 = vpop.permute.xlu2 %1149  ;;  %v1130_v19 = vpop.permute.xlu1 %1129 }
 0x551   :  { %v1222_v29 = vadd.f32 %v1150_v40, %v1029_v34  ;;  %v1212_v43 = vadd.f32 %v1130_v19, %v1019_v46  ;;  %v1128_v14 = vpop.permute.xlu0 %1127 }
 0x552   :  { %v1211_v39 = vadd.f32 %v1128_v14, %v1018_v45 }
 0x553   :  { %1254 = vst.msk [vmem:[%s2587_s5 + $0xb8] sm:$0xff] %vm154_vm0, %v1222_v29 }
 0x554   :  { %1244 = vst.msk [vmem:[%s2587_s5 + $0x68] sm:$0xff] %vm154_vm0, %v1212_v43 }
 0x555   :  { %1243 = vst.msk [vmem:[%s2587_s5 + $0x60] sm:$0xff] %vm154_vm0, %v1211_v39 }
 0x558   :  { %v1156_v44 = vpop.permute.xlu2 %1155  ;;  %v1136_v11 = vpop.permute.xlu1 %1135 }
 0x559   :  { %v1225_v17 = vadd.f32 %v1156_v44, %v1032_v4  ;;  %v1215_v32 = vadd.f32 %v1136_v11, %v1022_v16  ;;  %v1134_v31 = vpop.permute.xlu0 %1133 }
 0x55a   :  { %v1214_v42 = vadd.f32 %v1134_v31, %v1021_v50 }
 0x55b   :  { %1257 = vst.msk [vmem:[%s2587_s5 + $0xd0] sm:$0xff] %vm154_vm0, %v1225_v17 }
 0x55c   :  { %1247 = vst.msk [vmem:[%s2587_s5 + $0x80] sm:$0xff] %vm154_vm0, %v1215_v32 }
 0x55d   :  { %1246 = vst.msk [vmem:[%s2587_s5 + $0x78] sm:$0xff] %vm154_vm0, %v1214_v42 }
 0x560   :  { %v1162_v12 = vpop.permute.xlu2 %1161  ;;  %v1142_v33 = vpop.permute.xlu1 %1141 }
 0x561   :  { %v1228_v59 = vadd.f32 %v1162_v12, %v1035_v52  ;;  %v1218_v28 = vadd.f32 %v1142_v33, %v1025_v5  ;;  %v1140_v54 = vpop.permute.xlu0 %1139 }
 0x562   :  { %v1217_v2 = vadd.f32 %v1140_v54, %v1024_v23 }
 0x563   :  { %1260 = vst.msk [vmem:[%s2587_s5 + $0xe8] sm:$0xff] %vm154_vm0, %v1228_v59 }
 0x564   :  { %1250 = vst.msk [vmem:[%s2587_s5 + $0x98] sm:$0xff] %vm154_vm0, %v1218_v28 }
 0x565   :  { %1249 = vst.msk [vmem:[%s2587_s5 + $0x90] sm:$0xff] %vm154_vm0, %v1217_v2 }
 0x568   :  { %v1148_v49 = vpop.permute.xlu1 %1147 }
 0x569   :  { %v1221_v58 = vadd.f32 %v1148_v49, %v1028_v10  ;;  %v1146_v57 = vpop.permute.xlu0 %1145 }
 0x56a   :  { %v1220_v8 = vadd.f32 %v1146_v57, %v1027_v9 }
 0x56b   :  { %1253 = vst.msk [vmem:[%s2587_s5 + $0xb0] sm:$0xff] %vm154_vm0, %v1221_v58 }
 0x56c   :  { %1252 = vst.msk [vmem:[%s2587_s5 + $0xa8] sm:$0xff] %vm154_vm0, %v1220_v8 }
 0x570   :  { %v1154_v53 = vpop.permute.xlu1 %1153 }
 0x571   :  { %v1224_v61 = vadd.f32 %v1154_v53, %v1031_v18  ;;  %v1152_v36 = vpop.permute.xlu0 %1151 }
 0x572   :  { %v1223_v48 = vadd.f32 %v1152_v36, %v1030_v15 }
 0x573   :  { %1256 = vst.msk [vmem:[%s2587_s5 + $0xc8] sm:$0xff] %vm154_vm0, %v1224_v61 }
 0x574   :  { %1255 = vst.msk [vmem:[%s2587_s5 + $0xc0] sm:$0xff] %vm154_vm0, %v1223_v48 }
 0x578   :  { %v1160_v26 = vpop.permute.xlu1 %1159 }
 0x579   :  { %v1227_v38 = vadd.f32 %v1160_v26, %v1034_v21  ;;  %v1158_v27 = vpop.permute.xlu0 %1157 }
 0x57a   :  { %v1226_v35 = vadd.f32 %v1158_v27, %v1033_v25 }
 0x57b   :  { %1259 = vst.msk [vmem:[%s2587_s5 + $0xe0] sm:$0xff] %vm154_vm0, %v1227_v38 }
 0x57c   :  { %1258 = vst.msk [vmem:[%s2587_s5 + $0xd8] sm:$0xff] %vm154_vm0, %v1226_v35 }
 0x580   :  { %v1166_v6 = vpop.permute.xlu1 %1165 }
 0x581   :  { %v1230_v0 = vadd.f32 %v1166_v6, %v1037_v55  ;;  %v1164_v30 = vpop.permute.xlu0 %1163 }
 0x582   :  { %v1229_v37 = vadd.f32 %v1164_v30, %v1036_v51 }
 0x583   :  { %1262 = vst.msk [vmem:[%s2587_s5 + $0xf8] sm:$0xff] %vm154_vm0, %v1230_v0 }
 0x584   :  { %1261 = vst.msk [vmem:[%s2587_s5 + $0xf0] sm:$0xff] %vm154_vm0, %v1229_v37 }

</bundles_post_ra>
